<compile_context>
chip_gen: v6e
topology: v6e:2x2x1
jax: 0.10.0
libtpu: 0.0.40
codegen_flags: <defaults>
</compile_context>

<pallas_src>
import jax
import jax.numpy as jnp
from jax import lax
from jax.experimental import pallas as pl
from jax.experimental.pallas import tpu as pltpu


# --------------------------------------------------------------------------------------
# Fused encoder + CRF kernel (single invocation, whole batch)
# --------------------------------------------------------------------------------------
def _layer_norm(x, g, b, eps=1e-5):
    mu = jnp.mean(x, axis=1, keepdims=True)
    xc = x - mu
    var = jnp.mean(xc * xc, axis=1, keepdims=True)
    return xc * lax.rsqrt(var + eps) * g + b


def fused_kernel(x_ref, maskf_ref, transT_ref,
                 wqv_ref, bqv_ref, w2_ref, b2_ref, wo_ref, bo_ref,
                 g1_ref, be1_ref, wf1_ref, bf1_ref, wf2_ref, bf2_ref,
                 g2_ref, be2_ref, we_ref, bee_ref,
                 trg_ref, maski_ref, trans_s_ref,
                 nll_ref, bp_ref, last_ref,
                 emit_vmem):
    f32 = jnp.float32
    B, S, T = emit_vmem.shape
    Dh = w2_ref.shape[0]

    # ---------------- encoder (all rows of the batch at once) ----------------
    x2 = x_ref[...]                                                           # (B*S, D)
    # fused W1|Wv projection: one MXU pass, then static lane slices
    proj = jnp.dot(x2, wqv_ref[...], preferred_element_type=f32) + bqv_ref[...]
    h = jnp.maximum(proj[:, :Dh], 0.0)                                        # (B*S, Dh)
    v = proj[:, Dh:]                                                          # (B*S, D)
    logits = jnp.dot(h, w2_ref[...], preferred_element_type=f32) + b2_ref[...]  # (B*S, S)

    ctx_rows = []
    for b in range(B):                                                        # static unroll
        key_mask = maskf_ref[b]                                               # (1, S)
        lg = logits[b * S:(b + 1) * S, :] + (key_mask - 1.0) * 1e9            # (S, S)
        lmax = jnp.max(lg, axis=1, keepdims=True)
        p = jnp.exp(lg - lmax)
        attn = p * pl.reciprocal(jnp.sum(p, axis=1, keepdims=True), approx=True)
        ctx_rows.append(jnp.dot(attn, v[b * S:(b + 1) * S, :],
                                preferred_element_type=f32))
    ctx2 = jnp.concatenate(ctx_rows, axis=0)                                  # (B*S, D)
    ctx2 = jnp.dot(ctx2, wo_ref[...], preferred_element_type=f32) + bo_ref[...]
    h1 = _layer_norm(x2 + ctx2, g1_ref[...], be1_ref[...])

    ff = jnp.maximum(
        jnp.dot(h1, wf1_ref[...], preferred_element_type=f32) + bf1_ref[...], 0.0)
    ff = jnp.dot(ff, wf2_ref[...], preferred_element_type=f32) + bf2_ref[...]
    h2 = _layer_norm(h1 + ff, g2_ref[...], be2_ref[...])

    emit2 = jnp.dot(h2, we_ref[...], preferred_element_type=f32) + bee_ref[...]  # (B*S, T)
    for b in range(B):
        emit_vmem[b] = emit2[b * S:(b + 1) * S, :]                            # (S, T)

    # ---------------- CRF: forward logZ + gold score + Viterbi ----------------
    transT = transT_ref[...]                          # (T, T): transT[j, i] = trans[i, j]
    lane = lax.broadcasted_iota(jnp.int32, (1, T), 1)
    lane_f = lane.astype(f32)
    src_f = lax.broadcasted_iota(jnp.int32, (T, T), 1).astype(f32)   # source tag id / lane
    eye = (lax.broadcasted_iota(jnp.int32, (T, T), 0) ==
           lax.broadcasted_iota(jnp.int32, (T, T), 1))

    alphas, deltas, golds = [], [], []
    for b in range(B):
        e0 = emit_vmem[b, pl.ds(0, 1), :]                                     # (1, T)
        y0 = trg_ref[b, 0]
        m0f = maski_ref[b, 0].astype(f32)
        alphas.append(e0)
        deltas.append(e0)
        golds.append(m0f * jnp.sum(jnp.where(lane == y0, e0, 0.0),
                                   axis=1, keepdims=True))                    # (1, 1)
        bp_ref[b, pl.ds(0, 1), :] = lane                                      # identity at t=0
    carry0 = (tuple(alphas), tuple(deltas), tuple(golds))

    def body(t, carry):
        alphas, deltas, golds = carry
        na, nd, ng = [], [], []
        for b in range(B):                                                    # static unroll
            alpha, delta, gold = alphas[b], deltas[b], golds[b]
            e_t = emit_vmem[b, pl.ds(t, 1), :]                                # (1, T)
            m = maski_ref[b, t]
            mf = m.astype(f32)
            y_t = trg_ref[b, t]
            y_p = trg_ref[b, t - 1]

            # vectorized over all tag pairs: sa[j, i] = alpha[i] + trans[i, j]
            sa = alpha + transT                                               # (T, T)
            am = jnp.max(sa, axis=1, keepdims=True)                           # (T, 1)
            lse = am + jnp.log(jnp.sum(jnp.exp(sa - am), axis=1, keepdims=True))
            new_alpha = jnp.sum(jnp.where(eye, lse, 0.0),
                                axis=0, keepdims=True) + e_t                  # (1, T)

            sd = delta + transT                                               # (T, T)
            dm = jnp.max(sd, axis=1, keepdims=True)                           # (T, 1)
            arg = jnp.min(jnp.where(sd >= dm, src_f, float(T)),
                          axis=1, keepdims=True)                              # (T, 1)
            new_delta = jnp.sum(jnp.where(eye, dm, 0.0),
                                axis=0, keepdims=True) + e_t                  # (1, T)
            bp_row = jnp.sum(jnp.where(eye, arg, 0.0),
                             axis=0, keepdims=True).astype(jnp.int32)         # (1, T)

            # gold path: emission at y_t (lane select) + transition score (scalar SMEM read)
            eg = jnp.sum(jnp.where(lane == y_t, e_t, 0.0), axis=1, keepdims=True)
            tg = trans_s_ref[y_p, y_t]
            gold = gold + mf * (eg + tg)

            # mask gating: padded steps pass state through unchanged
            alpha = mf * new_alpha + (1.0 - mf) * alpha
            delta = mf * new_delta + (1.0 - mf) * delta
            bp_row = m * bp_row + (1 - m) * lane
            bp_ref[b, pl.ds(t, 1), :] = bp_row

            na.append(alpha)
            nd.append(delta)
            ng.append(gold)
        return (tuple(na), tuple(nd), tuple(ng))

    alphas, deltas, golds = lax.fori_loop(1, S, body, carry0)

    for b in range(B):
        alpha, delta, gold = alphas[b], deltas[b], golds[b]
        am = jnp.max(alpha, axis=1, keepdims=True)
        logz = am + jnp.log(jnp.sum(jnp.exp(alpha - am), axis=1, keepdims=True))
        nll_ref[b] = logz - gold
        dm = jnp.max(delta, axis=1, keepdims=True)
        best = jnp.min(jnp.where(delta >= dm, lane_f, float(T)),
                       axis=1, keepdims=True)
        last_ref[b] = best.astype(jnp.int32)


def _fused_call(x2, maskf, transT, wqv, bqv, w2, b2, wo, bo, g1, be1,
                wf1, bf1, wf2, bf2, g2, be2, we, bee, trg, maski, trans,
                B, S, T):
    vm = pl.BlockSpec(memory_space=pltpu.MemorySpace.VMEM)
    sm = pl.BlockSpec(memory_space=pltpu.MemorySpace.SMEM)
    in_specs = [vm] * 19 + [sm, sm, sm]
    out_shape = (jax.ShapeDtypeStruct((B, 1, 1), jnp.float32),   # per-sequence NLL
                 jax.ShapeDtypeStruct((B, S, T), jnp.int32),     # Viterbi backpointers
                 jax.ShapeDtypeStruct((B, 1, 1), jnp.int32))     # last best tag
    return pl.pallas_call(
        fused_kernel,
        out_shape=out_shape,
        in_specs=in_specs,
        out_specs=(vm, vm, vm),
        scratch_shapes=[pltpu.VMEM((B, S, T), jnp.float32)],     # emissions stay in VMEM
    )(x2, maskf, transT, wqv, bqv, w2, b2, wo, bo, g1, be1,
      wf1, bf1, wf2, bf2, g2, be2, we, bee, trg, maski, trans)


# --------------------------------------------------------------------------------------
# Glue: Viterbi backtrace (tiny scalar bookkeeping), full model forward
# --------------------------------------------------------------------------------------
def viterbi_backtrace(bp, last_tag):
    def single(bp_b, last_b):
        def step(cur, bp_row):
            prev = bp_row[cur]
            return prev, cur
        _, path_rev = lax.scan(step, last_b, bp_b[::-1])
        return path_rev[::-1]
    return jax.vmap(single)(bp, last_tag)


def syn_model_forward(params, src, trg, src_mask):
    # mirrors: encoder_output = encoder(src, src_mask); loss, path = decoder.loss(...)
    # (the PyTorch `use_gpu` flag has no semantic effect here)
    B, S = src.shape
    D = params["emb"].shape[1]
    T = params["trans"].shape[0]

    x = jnp.take(params["emb"], src, axis=0) + params["pe"][None, :, :]   # (B, S, D) glue gather
    x2 = x.reshape(B * S, D).astype(jnp.float32)
    maskf = src_mask.astype(jnp.float32).reshape(B, 1, S)
    maski = src_mask.astype(jnp.int32)
    trg_i = trg.astype(jnp.int32)

    wqv = jnp.concatenate([params["W1"], params["Wv"]], axis=1)           # fused projection
    bqv = jnp.concatenate([params["b1"], params["bv"]], axis=1)

    nll, bp, last = _fused_call(
        x2, maskf, params["trans"].T, wqv, bqv,
        params["W2"], params["b2"], params["Wo"], params["bo"],
        params["g1"], params["be1"], params["Wf1"], params["bf1"],
        params["Wf2"], params["bf2"], params["g2"], params["be2"],
        params["We"], params["be"], trg_i, maski, params["trans"],
        B=B, S=S, T=T)

    loss = jnp.mean(nll[:, 0, 0])
    path = viterbi_backtrace(bp, last[:, 0, 0])
    path = path * src_mask.astype(path.dtype)
    return loss, path


def init_params(key, vocab, D, Dh, Df, T, S):
    ks = jax.random.split(key, 10)

    def w(k, shape, scale=0.1):
        return (scale * jax.random.normal(k, shape)).astype(jnp.float32)

    pos = jnp.arange(S, dtype=jnp.float32)[:, None]
    i = jnp.arange(D, dtype=jnp.float32)[None, :]
    angle = pos / jnp.power(10000.0, (2.0 * jnp.floor(i / 2.0)) / D)
    pe = jnp.where(jnp.arange(D)[None, :] % 2 == 0,
                   jnp.sin(angle), jnp.cos(angle)).astype(jnp.float32)

    return {
        "emb": w(ks[0], (vocab, D)),
        "pe": pe,
        "W1": w(ks[1], (D, Dh)), "b1": jnp.zeros((1, Dh), jnp.float32),
        "W2": w(ks[2], (Dh, S)), "b2": jnp.zeros((1, S), jnp.float32),
        "Wv": w(ks[3], (D, D)), "bv": jnp.zeros((1, D), jnp.float32),
        "Wo": w(ks[4], (D, D)), "bo": jnp.zeros((1, D), jnp.float32),
        "g1": jnp.ones((1, D), jnp.float32), "be1": jnp.zeros((1, D), jnp.float32),
        "Wf1": w(ks[5], (D, Df)), "bf1": jnp.zeros((1, Df), jnp.float32),
        "Wf2": w(ks[6], (Df, D)), "bf2": jnp.zeros((1, D), jnp.float32),
        "g2": jnp.ones((1, D), jnp.float32), "be2": jnp.zeros((1, D), jnp.float32),
        "We": w(ks[7], (D, T)), "be": jnp.zeros((1, T), jnp.float32),
        "trans": w(ks[8], (T, T)),
    }


if __name__ == "__main__":
    B, S, D, Dh, Df, V, T = 2, 8, 32, 32, 64, 50, 8
    key = jax.random.PRNGKey(0)
    kp, ksrc, ktrg = jax.random.split(key, 3)

    params = init_params(kp, V, D, Dh, Df, T, S)
    src = jax.random.randint(ksrc, (B, S), 0, V, dtype=jnp.int32)
    trg = jax.random.randint(ktrg, (B, S), 0, T, dtype=jnp.int32)
    lengths = jnp.array([S, 5], dtype=jnp.int32)
    src_mask = (jnp.arange(S)[None, :] < lengths[:, None]).astype(jnp.int32)

    loss, path = jax.jit(syn_model_forward)(params, src, trg, src_mask)
    jax.block_until_ready((loss, path))
    # TODO(synk): syn_Encoder / CRF_decoder sources were not provided; Synthesizer-style dense
    # attention + standard linear-chain CRF without start/stop transitions were assumed.
    print("KERNEL_OK")
</pallas_src>

<mosaic_0001>
module attributes {stable_mosaic.version = 11 : i64} {
  func.func @fused_kernel(%arg0: memref<16x32xf32, #tpu.memory_space<vmem>>, %arg1: memref<2x1x8xf32, #tpu.memory_space<vmem>>, %arg2: memref<8x8xf32, #tpu.memory_space<vmem>>, %arg3: memref<32x64xf32, #tpu.memory_space<vmem>>, %arg4: memref<1x64xf32, #tpu.memory_space<vmem>>, %arg5: memref<32x8xf32, #tpu.memory_space<vmem>>, %arg6: memref<1x8xf32, #tpu.memory_space<vmem>>, %arg7: memref<32x32xf32, #tpu.memory_space<vmem>>, %arg8: memref<1x32xf32, #tpu.memory_space<vmem>>, %arg9: memref<1x32xf32, #tpu.memory_space<vmem>>, %arg10: memref<1x32xf32, #tpu.memory_space<vmem>>, %arg11: memref<32x64xf32, #tpu.memory_space<vmem>>, %arg12: memref<1x64xf32, #tpu.memory_space<vmem>>, %arg13: memref<64x32xf32, #tpu.memory_space<vmem>>, %arg14: memref<1x32xf32, #tpu.memory_space<vmem>>, %arg15: memref<1x32xf32, #tpu.memory_space<vmem>>, %arg16: memref<1x32xf32, #tpu.memory_space<vmem>>, %arg17: memref<32x8xf32, #tpu.memory_space<vmem>>, %arg18: memref<1x8xf32, #tpu.memory_space<vmem>>, %arg19: memref<2x8xi32, #tpu.memory_space<smem>>, %arg20: memref<2x8xi32, #tpu.memory_space<smem>>, %arg21: memref<8x8xf32, #tpu.memory_space<smem>>, %arg22: memref<2x1x1xf32, #tpu.memory_space<vmem>>, %arg23: memref<2x8x8xi32, #tpu.memory_space<vmem>>, %arg24: memref<2x1x1xi32, #tpu.memory_space<vmem>>, %arg25: memref<2x8x8xf32, #tpu.memory_space<vmem>>) attributes {dimension_semantics = [], scalar_prefetch = 0 : i64, scratch_operands = 1 : i64, tpu.core_type = #tpu.core_type<tc>} {
    %c0 = arith.constant 0 : index
    %c0_0 = arith.constant 0 : index
    %0 = vector.load %arg0[%c0, %c0_0] : memref<16x32xf32, #tpu.memory_space<vmem>>, vector<16x32xf32>
    %c0_1 = arith.constant 0 : index
    %c0_2 = arith.constant 0 : index
    %1 = vector.load %arg3[%c0_1, %c0_2] : memref<32x64xf32, #tpu.memory_space<vmem>>, vector<32x64xf32>
    %cst = arith.constant dense<0.000000e+00> : vector<16x64xf32>
    %2 = tpu.matmul %0, %1, %cst {dimension_numbers = #tpu.dot_dimension_numbers<[1], [0], [0], [1], [0, 0, 1, 1], [], []>} : vector<16x32xf32>, vector<32x64xf32>, vector<16x64xf32> -> vector<16x64xf32>
    %c0_3 = arith.constant 0 : index
    %c0_4 = arith.constant 0 : index
    %3 = vector.load %arg4[%c0_3, %c0_4] : memref<1x64xf32, #tpu.memory_space<vmem>>, vector<1x64xf32>
    %4 = vector.broadcast %3 : vector<1x64xf32> to vector<16x64xf32>
    %5 = arith.addf %2, %4 : vector<16x64xf32>
    %6 = vector.extract_strided_slice %5 {offsets = [0, 0], sizes = [16, 32], strides = [1, 1]} : vector<16x64xf32> to vector<16x32xf32>
    %cst_5 = arith.constant 0.000000e+00 : f32
    %7 = vector.broadcast %cst_5 : f32 to vector<16x32xf32>
    %8 = arith.maximumf %6, %7 : vector<16x32xf32>
    %9 = vector.extract_strided_slice %5 {offsets = [0, 32], sizes = [16, 32], strides = [1, 1]} : vector<16x64xf32> to vector<16x32xf32>
    %c0_6 = arith.constant 0 : index
    %c0_7 = arith.constant 0 : index
    %10 = vector.load %arg5[%c0_6, %c0_7] : memref<32x8xf32, #tpu.memory_space<vmem>>, vector<32x8xf32>
    %cst_8 = arith.constant dense<0.000000e+00> : vector<16x8xf32>
    %11 = tpu.matmul %8, %10, %cst_8 {dimension_numbers = #tpu.dot_dimension_numbers<[1], [0], [0], [1], [0, 0, 1, 1], [], []>} : vector<16x32xf32>, vector<32x8xf32>, vector<16x8xf32> -> vector<16x8xf32>
    %c0_9 = arith.constant 0 : index
    %c0_10 = arith.constant 0 : index
    %12 = vector.load %arg6[%c0_9, %c0_10] : memref<1x8xf32, #tpu.memory_space<vmem>>, vector<1x8xf32>
    %13 = vector.broadcast %12 : vector<1x8xf32> to vector<16x8xf32>
    %14 = arith.addf %11, %13 : vector<16x8xf32>
    %c0_11 = arith.constant 0 : index
    %c0_12 = arith.constant 0 : index
    %c0_13 = arith.constant 0 : index
    %15 = vector.load %arg1[%c0_11, %c0_12, %c0_13] : memref<2x1x8xf32, #tpu.memory_space<vmem>>, vector<1x1x8xf32>
    %16 = vector.shape_cast %15 : vector<1x1x8xf32> to vector<1x8xf32>
    %17 = vector.extract_strided_slice %14 {offsets = [0, 0], sizes = [8, 8], strides = [1, 1]} : vector<16x8xf32> to vector<8x8xf32>
    %cst_14 = arith.constant 1.000000e+00 : f32
    %18 = vector.broadcast %cst_14 : f32 to vector<1x8xf32>
    %19 = arith.subf %16, %18 : vector<1x8xf32>
    %cst_15 = arith.constant 1.000000e+09 : f32
    %20 = vector.broadcast %cst_15 : f32 to vector<1x8xf32>
    %21 = arith.mulf %19, %20 : vector<1x8xf32>
    %22 = vector.broadcast %21 : vector<1x8xf32> to vector<8x8xf32>
    %23 = arith.addf %17, %22 : vector<8x8xf32>
    %cst_16 = arith.constant dense<0xFF800000> : vector<8xf32>
    %24 = vector.multi_reduction <maximumf>, %23, %cst_16 [1] : vector<8x8xf32> to vector<8xf32>
    %25 = vector.shape_cast %24 : vector<8xf32> to vector<8x1xf32>
    %26 = vector.broadcast %25 : vector<8x1xf32> to vector<8x8xf32>
    %27 = arith.subf %23, %26 : vector<8x8xf32>
    %28 = math.exp %27 : vector<8x8xf32>
    %cst_17 = arith.constant dense<0.000000e+00> : vector<8xf32>
    %29 = vector.multi_reduction <add>, %28, %cst_17 [1] : vector<8x8xf32> to vector<8xf32>
    %30 = vector.shape_cast %29 : vector<8xf32> to vector<8x1xf32>
    %31 = tpu.reciprocal %30 {approx = true} : vector<8x1xf32> -> vector<8x1xf32>
    %32 = vector.broadcast %31 : vector<8x1xf32> to vector<8x8xf32>
    %33 = arith.mulf %28, %32 : vector<8x8xf32>
    %34 = vector.extract_strided_slice %9 {offsets = [0, 0], sizes = [8, 32], strides = [1, 1]} : vector<16x32xf32> to vector<8x32xf32>
    %cst_18 = arith.constant dense<0.000000e+00> : vector<8x32xf32>
    %35 = tpu.matmul %33, %34, %cst_18 {dimension_numbers = #tpu.dot_dimension_numbers<[1], [0], [0], [1], [0, 0, 1, 1], [], []>} : vector<8x8xf32>, vector<8x32xf32>, vector<8x32xf32> -> vector<8x32xf32>
    %c1 = arith.constant 1 : index
    %c0_19 = arith.constant 0 : index
    %c0_20 = arith.constant 0 : index
    %36 = vector.load %arg1[%c1, %c0_19, %c0_20] : memref<2x1x8xf32, #tpu.memory_space<vmem>>, vector<1x1x8xf32>
    %37 = vector.shape_cast %36 : vector<1x1x8xf32> to vector<1x8xf32>
    %38 = vector.extract_strided_slice %14 {offsets = [8, 0], sizes = [8, 8], strides = [1, 1]} : vector<16x8xf32> to vector<8x8xf32>
    %cst_21 = arith.constant 1.000000e+00 : f32
    %39 = vector.broadcast %cst_21 : f32 to vector<1x8xf32>
    %40 = arith.subf %37, %39 : vector<1x8xf32>
    %cst_22 = arith.constant 1.000000e+09 : f32
    %41 = vector.broadcast %cst_22 : f32 to vector<1x8xf32>
    %42 = arith.mulf %40, %41 : vector<1x8xf32>
    %43 = vector.broadcast %42 : vector<1x8xf32> to vector<8x8xf32>
    %44 = arith.addf %38, %43 : vector<8x8xf32>
    %cst_23 = arith.constant dense<0xFF800000> : vector<8xf32>
    %45 = vector.multi_reduction <maximumf>, %44, %cst_23 [1] : vector<8x8xf32> to vector<8xf32>
    %46 = vector.shape_cast %45 : vector<8xf32> to vector<8x1xf32>
    %47 = vector.broadcast %46 : vector<8x1xf32> to vector<8x8xf32>
    %48 = arith.subf %44, %47 : vector<8x8xf32>
    %49 = math.exp %48 : vector<8x8xf32>
    %cst_24 = arith.constant dense<0.000000e+00> : vector<8xf32>
    %50 = vector.multi_reduction <add>, %49, %cst_24 [1] : vector<8x8xf32> to vector<8xf32>
    %51 = vector.shape_cast %50 : vector<8xf32> to vector<8x1xf32>
    %52 = tpu.reciprocal %51 {approx = true} : vector<8x1xf32> -> vector<8x1xf32>
    %53 = vector.broadcast %52 : vector<8x1xf32> to vector<8x8xf32>
    %54 = arith.mulf %49, %53 : vector<8x8xf32>
    %55 = vector.extract_strided_slice %9 {offsets = [8, 0], sizes = [8, 32], strides = [1, 1]} : vector<16x32xf32> to vector<8x32xf32>
    %cst_25 = arith.constant dense<0.000000e+00> : vector<8x32xf32>
    %56 = tpu.matmul %54, %55, %cst_25 {dimension_numbers = #tpu.dot_dimension_numbers<[1], [0], [0], [1], [0, 0, 1, 1], [], []>} : vector<8x8xf32>, vector<8x32xf32>, vector<8x32xf32> -> vector<8x32xf32>
    %57 = tpu.concatenate %35, %56 in 0 : vector<8x32xf32>, vector<8x32xf32> -> vector<16x32xf32>
    %c0_26 = arith.constant 0 : index
    %c0_27 = arith.constant 0 : index
    %58 = vector.load %arg7[%c0_26, %c0_27] : memref<32x32xf32, #tpu.memory_space<vmem>>, vector<32x32xf32>
    %cst_28 = arith.constant dense<0.000000e+00> : vector<16x32xf32>
    %59 = tpu.matmul %57, %58, %cst_28 {dimension_numbers = #tpu.dot_dimension_numbers<[1], [0], [0], [1], [0, 0, 1, 1], [], []>} : vector<16x32xf32>, vector<32x32xf32>, vector<16x32xf32> -> vector<16x32xf32>
    %c0_29 = arith.constant 0 : index
    %c0_30 = arith.constant 0 : index
    %60 = vector.load %arg8[%c0_29, %c0_30] : memref<1x32xf32, #tpu.memory_space<vmem>>, vector<1x32xf32>
    %61 = vector.broadcast %60 : vector<1x32xf32> to vector<16x32xf32>
    %62 = arith.addf %59, %61 : vector<16x32xf32>
    %63 = arith.addf %0, %62 : vector<16x32xf32>
    %c0_31 = arith.constant 0 : index
    %c0_32 = arith.constant 0 : index
    %64 = vector.load %arg9[%c0_31, %c0_32] : memref<1x32xf32, #tpu.memory_space<vmem>>, vector<1x32xf32>
    %c0_33 = arith.constant 0 : index
    %c0_34 = arith.constant 0 : index
    %65 = vector.load %arg10[%c0_33, %c0_34] : memref<1x32xf32, #tpu.memory_space<vmem>>, vector<1x32xf32>
    %cst_35 = arith.constant dense<0.000000e+00> : vector<16xf32>
    %66 = vector.multi_reduction <add>, %63, %cst_35 [1] : vector<16x32xf32> to vector<16xf32>
    %67 = vector.shape_cast %66 : vector<16xf32> to vector<16x1xf32>
    %cst_36 = arith.constant 3.200000e+01 : f32
    %68 = vector.broadcast %cst_36 : f32 to vector<16x1xf32>
    %69 = arith.divf %67, %68 : vector<16x1xf32>
    %70 = vector.broadcast %69 : vector<16x1xf32> to vector<16x32xf32>
    %71 = arith.subf %63, %70 : vector<16x32xf32>
    %72 = arith.mulf %71, %71 : vector<16x32xf32>
    %cst_37 = arith.constant dense<0.000000e+00> : vector<16xf32>
    %73 = vector.multi_reduction <add>, %72, %cst_37 [1] : vector<16x32xf32> to vector<16xf32>
    %74 = vector.shape_cast %73 : vector<16xf32> to vector<16x1xf32>
    %cst_38 = arith.constant 3.200000e+01 : f32
    %75 = vector.broadcast %cst_38 : f32 to vector<16x1xf32>
    %76 = arith.divf %74, %75 : vector<16x1xf32>
    %cst_39 = arith.constant 9.99999974E-6 : f32
    %77 = vector.broadcast %cst_39 : f32 to vector<16x1xf32>
    %78 = arith.addf %76, %77 : vector<16x1xf32>
    %79 = math.rsqrt %78 : vector<16x1xf32>
    %80 = vector.broadcast %79 : vector<16x1xf32> to vector<16x32xf32>
    %81 = arith.mulf %71, %80 : vector<16x32xf32>
    %82 = vector.broadcast %64 : vector<1x32xf32> to vector<16x32xf32>
    %83 = arith.mulf %81, %82 : vector<16x32xf32>
    %84 = vector.broadcast %65 : vector<1x32xf32> to vector<16x32xf32>
    %85 = arith.addf %83, %84 : vector<16x32xf32>
    %c0_40 = arith.constant 0 : index
    %c0_41 = arith.constant 0 : index
    %86 = vector.load %arg11[%c0_40, %c0_41] : memref<32x64xf32, #tpu.memory_space<vmem>>, vector<32x64xf32>
    %cst_42 = arith.constant dense<0.000000e+00> : vector<16x64xf32>
    %87 = tpu.matmul %85, %86, %cst_42 {dimension_numbers = #tpu.dot_dimension_numbers<[1], [0], [0], [1], [0, 0, 1, 1], [], []>} : vector<16x32xf32>, vector<32x64xf32>, vector<16x64xf32> -> vector<16x64xf32>
    %c0_43 = arith.constant 0 : index
    %c0_44 = arith.constant 0 : index
    %88 = vector.load %arg12[%c0_43, %c0_44] : memref<1x64xf32, #tpu.memory_space<vmem>>, vector<1x64xf32>
    %89 = vector.broadcast %88 : vector<1x64xf32> to vector<16x64xf32>
    %90 = arith.addf %87, %89 : vector<16x64xf32>
    %cst_45 = arith.constant 0.000000e+00 : f32
    %91 = vector.broadcast %cst_45 : f32 to vector<16x64xf32>
    %92 = arith.maximumf %90, %91 : vector<16x64xf32>
    %c0_46 = arith.constant 0 : index
    %c0_47 = arith.constant 0 : index
    %93 = vector.load %arg13[%c0_46, %c0_47] : memref<64x32xf32, #tpu.memory_space<vmem>>, vector<64x32xf32>
    %cst_48 = arith.constant dense<0.000000e+00> : vector<16x32xf32>
    %94 = tpu.matmul %92, %93, %cst_48 {dimension_numbers = #tpu.dot_dimension_numbers<[1], [0], [0], [1], [0, 0, 1, 1], [], []>} : vector<16x64xf32>, vector<64x32xf32>, vector<16x32xf32> -> vector<16x32xf32>
    %c0_49 = arith.constant 0 : index
    %c0_50 = arith.constant 0 : index
    %95 = vector.load %arg14[%c0_49, %c0_50] : memref<1x32xf32, #tpu.memory_space<vmem>>, vector<1x32xf32>
    %96 = vector.broadcast %95 : vector<1x32xf32> to vector<16x32xf32>
    %97 = arith.addf %94, %96 : vector<16x32xf32>
    %98 = arith.addf %85, %97 : vector<16x32xf32>
    %c0_51 = arith.constant 0 : index
    %c0_52 = arith.constant 0 : index
    %99 = vector.load %arg15[%c0_51, %c0_52] : memref<1x32xf32, #tpu.memory_space<vmem>>, vector<1x32xf32>
    %c0_53 = arith.constant 0 : index
    %c0_54 = arith.constant 0 : index
    %100 = vector.load %arg16[%c0_53, %c0_54] : memref<1x32xf32, #tpu.memory_space<vmem>>, vector<1x32xf32>
    %cst_55 = arith.constant dense<0.000000e+00> : vector<16xf32>
    %101 = vector.multi_reduction <add>, %98, %cst_55 [1] : vector<16x32xf32> to vector<16xf32>
    %102 = vector.shape_cast %101 : vector<16xf32> to vector<16x1xf32>
    %cst_56 = arith.constant 3.200000e+01 : f32
    %103 = vector.broadcast %cst_56 : f32 to vector<16x1xf32>
    %104 = arith.divf %102, %103 : vector<16x1xf32>
    %105 = vector.broadcast %104 : vector<16x1xf32> to vector<16x32xf32>
    %106 = arith.subf %98, %105 : vector<16x32xf32>
    %107 = arith.mulf %106, %106 : vector<16x32xf32>
    %cst_57 = arith.constant dense<0.000000e+00> : vector<16xf32>
    %108 = vector.multi_reduction <add>, %107, %cst_57 [1] : vector<16x32xf32> to vector<16xf32>
    %109 = vector.shape_cast %108 : vector<16xf32> to vector<16x1xf32>
    %cst_58 = arith.constant 3.200000e+01 : f32
    %110 = vector.broadcast %cst_58 : f32 to vector<16x1xf32>
    %111 = arith.divf %109, %110 : vector<16x1xf32>
    %cst_59 = arith.constant 9.99999974E-6 : f32
    %112 = vector.broadcast %cst_59 : f32 to vector<16x1xf32>
    %113 = arith.addf %111, %112 : vector<16x1xf32>
    %114 = math.rsqrt %113 : vector<16x1xf32>
    %115 = vector.broadcast %114 : vector<16x1xf32> to vector<16x32xf32>
    %116 = arith.mulf %106, %115 : vector<16x32xf32>
    %117 = vector.broadcast %99 : vector<1x32xf32> to vector<16x32xf32>
    %118 = arith.mulf %116, %117 : vector<16x32xf32>
    %119 = vector.broadcast %100 : vector<1x32xf32> to vector<16x32xf32>
    %120 = arith.addf %118, %119 : vector<16x32xf32>
    %c0_60 = arith.constant 0 : index
    %c0_61 = arith.constant 0 : index
    %121 = vector.load %arg17[%c0_60, %c0_61] : memref<32x8xf32, #tpu.memory_space<vmem>>, vector<32x8xf32>
    %cst_62 = arith.constant dense<0.000000e+00> : vector<16x8xf32>
    %122 = tpu.matmul %120, %121, %cst_62 {dimension_numbers = #tpu.dot_dimension_numbers<[1], [0], [0], [1], [0, 0, 1, 1], [], []>} : vector<16x32xf32>, vector<32x8xf32>, vector<16x8xf32> -> vector<16x8xf32>
    %c0_63 = arith.constant 0 : index
    %c0_64 = arith.constant 0 : index
    %123 = vector.load %arg18[%c0_63, %c0_64] : memref<1x8xf32, #tpu.memory_space<vmem>>, vector<1x8xf32>
    %124 = vector.broadcast %123 : vector<1x8xf32> to vector<16x8xf32>
    %125 = arith.addf %122, %124 : vector<16x8xf32>
    %126 = vector.extract_strided_slice %125 {offsets = [0, 0], sizes = [8, 8], strides = [1, 1]} : vector<16x8xf32> to vector<8x8xf32>
    %c0_65 = arith.constant 0 : index
    %c0_66 = arith.constant 0 : index
    %c0_67 = arith.constant 0 : index
    %127 = vector.load %arg25[%c0_65, %c0_66, %c0_67] : memref<2x8x8xf32, #tpu.memory_space<vmem>>, vector<1x8x8xf32>
    %128 = vector.shape_cast %127 : vector<1x8x8xf32> to vector<8x8xf32>
    %129 = vector.shape_cast %126 : vector<8x8xf32> to vector<1x8x8xf32>
    tpu.vector_store %arg25[%c0_65, %c0_66, %c0_67], %129 {strides = array<i32>} : memref<2x8x8xf32, #tpu.memory_space<vmem>>, vector<1x8x8xf32>,
    %130 = vector.extract_strided_slice %125 {offsets = [8, 0], sizes = [8, 8], strides = [1, 1]} : vector<16x8xf32> to vector<8x8xf32>
    %c1_68 = arith.constant 1 : index
    %c0_69 = arith.constant 0 : index
    %c0_70 = arith.constant 0 : index
    %131 = vector.load %arg25[%c1_68, %c0_69, %c0_70] : memref<2x8x8xf32, #tpu.memory_space<vmem>>, vector<1x8x8xf32>
    %132 = vector.shape_cast %131 : vector<1x8x8xf32> to vector<8x8xf32>
    %133 = vector.shape_cast %130 : vector<8x8xf32> to vector<1x8x8xf32>
    tpu.vector_store %arg25[%c1_68, %c0_69, %c0_70], %133 {strides = array<i32>} : memref<2x8x8xf32, #tpu.memory_space<vmem>>, vector<1x8x8xf32>,
    %c0_71 = arith.constant 0 : index
    %c0_72 = arith.constant 0 : index
    %134 = vector.load %arg2[%c0_71, %c0_72] : memref<8x8xf32, #tpu.memory_space<vmem>>, vector<8x8xf32>
    %135 = tpu.iota {dimensions = array<i32: 1>} : vector<1x8xi32>
    %136 = arith.sitofp %135 : vector<1x8xi32> to vector<1x8xf32>
    %137 = tpu.iota {dimensions = array<i32: 1>} : vector<8x8xi32>
    %138 = arith.sitofp %137 : vector<8x8xi32> to vector<8x8xf32>
    %139 = tpu.iota {dimensions = array<i32: 0>} : vector<8x8xi32>
    %140 = tpu.iota {dimensions = array<i32: 1>} : vector<8x8xi32>
    %141 = arith.cmpi eq, %139, %140 : vector<8x8xi32>
    %c0_73 = arith.constant 0 : index
    %c0_74 = arith.constant 0 : index
    %c0_75 = arith.constant 0 : index
    %142 = vector.load %arg25[%c0_73, %c0_74, %c0_75] : memref<2x8x8xf32, #tpu.memory_space<vmem>>, vector<1x1x8xf32>
    %143 = vector.shape_cast %142 : vector<1x1x8xf32> to vector<1x8xf32>
    %c0_76 = arith.constant 0 : index
    %c0_77 = arith.constant 0 : index
    %144 = memref.load %arg19[%c0_76, %c0_77] : memref<2x8xi32, #tpu.memory_space<smem>>
    %c0_78 = arith.constant 0 : index
    %c0_79 = arith.constant 0 : index
    %145 = memref.load %arg20[%c0_78, %c0_79] : memref<2x8xi32, #tpu.memory_space<smem>>
    %146 = arith.sitofp %145 : i32 to f32
    %147 = vector.broadcast %144 : i32 to vector<1x8xi32>
    %148 = arith.cmpi eq, %135, %147 : vector<1x8xi32>
    %cst_80 = arith.constant 0.000000e+00 : f32
    %149 = vector.broadcast %cst_80 : f32 to vector<1x8xf32>
    %150 = arith.select %148, %143, %149 : vector<1x8xi1>, vector<1x8xf32>
    %cst_81 = arith.constant dense<0.000000e+00> : vector<1xf32>
    %151 = vector.multi_reduction <add>, %150, %cst_81 [1] : vector<1x8xf32> to vector<1xf32>
    %152 = vector.shape_cast %151 : vector<1xf32> to vector<1x1xf32>
    %153 = vector.broadcast %146 : f32 to vector<1x1xf32>
    %154 = arith.mulf %153, %152 : vector<1x1xf32>
    %c0_82 = arith.constant 0 : index
    %c0_83 = arith.constant 0 : index
    %c0_84 = arith.constant 0 : index
    %155 = vector.load %arg23[%c0_82, %c0_83, %c0_84] : memref<2x8x8xi32, #tpu.memory_space<vmem>>, vector<1x1x8xi32>
    %156 = vector.shape_cast %155 : vector<1x1x8xi32> to vector<1x8xi32>
    %157 = vector.shape_cast %135 : vector<1x8xi32> to vector<1x1x8xi32>
    tpu.vector_store %arg23[%c0_82, %c0_83, %c0_84], %157 {strides = array<i32>} : memref<2x8x8xi32, #tpu.memory_space<vmem>>, vector<1x1x8xi32>,
    %c1_85 = arith.constant 1 : index
    %c0_86 = arith.constant 0 : index
    %c0_87 = arith.constant 0 : index
    %158 = vector.load %arg25[%c1_85, %c0_86, %c0_87] : memref<2x8x8xf32, #tpu.memory_space<vmem>>, vector<1x1x8xf32>
    %159 = vector.shape_cast %158 : vector<1x1x8xf32> to vector<1x8xf32>
    %c1_88 = arith.constant 1 : index
    %c0_89 = arith.constant 0 : index
    %160 = memref.load %arg19[%c1_88, %c0_89] : memref<2x8xi32, #tpu.memory_space<smem>>
    %c1_90 = arith.constant 1 : index
    %c0_91 = arith.constant 0 : index
    %161 = memref.load %arg20[%c1_90, %c0_91] : memref<2x8xi32, #tpu.memory_space<smem>>
    %162 = arith.sitofp %161 : i32 to f32
    %163 = vector.broadcast %160 : i32 to vector<1x8xi32>
    %164 = arith.cmpi eq, %135, %163 : vector<1x8xi32>
    %cst_92 = arith.constant 0.000000e+00 : f32
    %165 = vector.broadcast %cst_92 : f32 to vector<1x8xf32>
    %166 = arith.select %164, %159, %165 : vector<1x8xi1>, vector<1x8xf32>
    %cst_93 = arith.constant dense<0.000000e+00> : vector<1xf32>
    %167 = vector.multi_reduction <add>, %166, %cst_93 [1] : vector<1x8xf32> to vector<1xf32>
    %168 = vector.shape_cast %167 : vector<1xf32> to vector<1x1xf32>
    %169 = vector.broadcast %162 : f32 to vector<1x1xf32>
    %170 = arith.mulf %169, %168 : vector<1x1xf32>
    %c1_94 = arith.constant 1 : index
    %c0_95 = arith.constant 0 : index
    %c0_96 = arith.constant 0 : index
    %171 = vector.load %arg23[%c1_94, %c0_95, %c0_96] : memref<2x8x8xi32, #tpu.memory_space<vmem>>, vector<1x1x8xi32>
    %172 = vector.shape_cast %171 : vector<1x1x8xi32> to vector<1x8xi32>
    %173 = vector.shape_cast %135 : vector<1x8xi32> to vector<1x1x8xi32>
    tpu.vector_store %arg23[%c1_94, %c0_95, %c0_96], %173 {strides = array<i32>} : memref<2x8x8xi32, #tpu.memory_space<vmem>>, vector<1x1x8xi32>,
    %c1_i32 = arith.constant 1 : i32
    %c7_i32 = arith.constant 7 : i32
    %174 = arith.addi %c1_i32, %c7_i32 : i32
    %c1_i32_97 = arith.constant 1 : i32
    %175:6 = scf.for %arg26 = %c1_i32 to %174 step %c1_i32_97 iter_args(%arg27 = %143, %arg28 = %159, %arg29 = %143, %arg30 = %159, %arg31 = %154, %arg32 = %170) -> (vector<1x8xf32>, vector<1x8xf32>, vector<1x8xf32>, vector<1x8xf32>, vector<1x1xf32>, vector<1x1xf32>)  : i32 {
      %c0_121 = arith.constant 0 : index
      %226 = arith.index_cast %arg26 : i32 to index
      %c0_122 = arith.constant 0 : index
      %227 = vector.load %arg25[%c0_121, %226, %c0_122] : memref<2x8x8xf32, #tpu.memory_space<vmem>>, vector<1x1x8xf32>
      %228 = vector.shape_cast %227 : vector<1x1x8xf32> to vector<1x8xf32>
      %c0_123 = arith.constant 0 : index
      %229 = arith.index_cast %arg26 : i32 to index
      %230 = memref.load %arg20[%c0_123, %229] : memref<2x8xi32, #tpu.memory_space<smem>>
      %231 = arith.sitofp %230 : i32 to f32
      %c0_124 = arith.constant 0 : index
      %232 = arith.index_cast %arg26 : i32 to index
      %233 = memref.load %arg19[%c0_124, %232] : memref<2x8xi32, #tpu.memory_space<smem>>
      %c1_i32_125 = arith.constant 1 : i32
      %234 = arith.subi %arg26, %c1_i32_125 : i32
      %c0_126 = arith.constant 0 : index
      %235 = arith.index_cast %234 : i32 to index
      %236 = memref.load %arg19[%c0_126, %235] : memref<2x8xi32, #tpu.memory_space<smem>>
      %237 = vector.broadcast %arg27 : vector<1x8xf32> to vector<8x8xf32>
      %238 = arith.addf %237, %134 : vector<8x8xf32>
      %cst_127 = arith.constant dense<0xFF800000> : vector<8xf32>
      %239 = vector.multi_reduction <maximumf>, %238, %cst_127 [1] : vector<8x8xf32> to vector<8xf32>
      %240 = vector.shape_cast %239 : vector<8xf32> to vector<8x1xf32>
      %241 = vector.broadcast %240 : vector<8x1xf32> to vector<8x8xf32>
      %242 = arith.subf %238, %241 : vector<8x8xf32>
      %243 = math.exp %242 : vector<8x8xf32>
      %cst_128 = arith.constant dense<0.000000e+00> : vector<8xf32>
      %244 = vector.multi_reduction <add>, %243, %cst_128 [1] : vector<8x8xf32> to vector<8xf32>
      %245 = vector.shape_cast %244 : vector<8xf32> to vector<8x1xf32>
      %246 = math.log %245 : vector<8x1xf32>
      %247 = arith.addf %240, %246 : vector<8x1xf32>
      %cst_129 = arith.constant 0.000000e+00 : f32
      %248 = vector.shape_cast %247 : vector<8x1xf32> to vector<8x1xf32>
      %249 = vector.broadcast %248 : vector<8x1xf32> to vector<8x8xf32>
      %250 = vector.broadcast %cst_129 : f32 to vector<8x8xf32>
      %251 = arith.select %141, %249, %250 : vector<8x8xi1>, vector<8x8xf32>
      %cst_130 = arith.constant dense<0.000000e+00> : vector<8xf32>
      %252 = vector.multi_reduction <add>, %251, %cst_130 [0] : vector<8x8xf32> to vector<8xf32>
      %253 = vector.shape_cast %252 : vector<8xf32> to vector<1x8xf32>
      %254 = arith.addf %253, %228 : vector<1x8xf32>
      %255 = vector.broadcast %arg29 : vector<1x8xf32> to vector<8x8xf32>
      %256 = arith.addf %255, %134 : vector<8x8xf32>
      %cst_131 = arith.constant dense<0xFF800000> : vector<8xf32>
      %257 = vector.multi_reduction <maximumf>, %256, %cst_131 [1] : vector<8x8xf32> to vector<8xf32>
      %258 = vector.shape_cast %257 : vector<8xf32> to vector<8x1xf32>
      %259 = vector.broadcast %258 : vector<8x1xf32> to vector<8x8xf32>
      %260 = arith.cmpf oge, %256, %259 : vector<8x8xf32>
      %cst_132 = arith.constant 8.000000e+00 : f32
      %261 = vector.broadcast %cst_132 : f32 to vector<8x8xf32>
      %262 = arith.select %260, %138, %261 : vector<8x8xi1>, vector<8x8xf32>
      %cst_133 = arith.constant dense<0x7F800000> : vector<8xf32>
      %263 = vector.multi_reduction <minimumf>, %262, %cst_133 [1] : vector<8x8xf32> to vector<8xf32>
      %264 = vector.shape_cast %263 : vector<8xf32> to vector<8x1xf32>
      %cst_134 = arith.constant 0.000000e+00 : f32
      %265 = vector.shape_cast %258 : vector<8x1xf32> to vector<8x1xf32>
      %266 = vector.broadcast %265 : vector<8x1xf32> to vector<8x8xf32>
      %267 = vector.broadcast %cst_134 : f32 to vector<8x8xf32>
      %268 = arith.select %141, %266, %267 : vector<8x8xi1>, vector<8x8xf32>
      %cst_135 = arith.constant dense<0.000000e+00> : vector<8xf32>
      %269 = vector.multi_reduction <add>, %268, %cst_135 [0] : vector<8x8xf32> to vector<8xf32>
      %270 = vector.shape_cast %269 : vector<8xf32> to vector<1x8xf32>
      %271 = arith.addf %270, %228 : vector<1x8xf32>
      %cst_136 = arith.constant 0.000000e+00 : f32
      %272 = vector.shape_cast %264 : vector<8x1xf32> to vector<8x1xf32>
      %273 = vector.broadcast %272 : vector<8x1xf32> to vector<8x8xf32>
      %274 = vector.broadcast %cst_136 : f32 to vector<8x8xf32>
      %275 = arith.select %141, %273, %274 : vector<8x8xi1>, vector<8x8xf32>
      %cst_137 = arith.constant dense<0.000000e+00> : vector<8xf32>
      %276 = vector.multi_reduction <add>, %275, %cst_137 [0] : vector<8x8xf32> to vector<8xf32>
      %277 = vector.shape_cast %276 : vector<8xf32> to vector<1x8xf32>
      %278 = arith.fptosi %277 : vector<1x8xf32> to vector<1x8xi32>
      %279 = vector.broadcast %233 : i32 to vector<1x8xi32>
      %280 = arith.cmpi eq, %135, %279 : vector<1x8xi32>
      %cst_138 = arith.constant 0.000000e+00 : f32
      %281 = vector.broadcast %cst_138 : f32 to vector<1x8xf32>
      %282 = arith.select %280, %228, %281 : vector<1x8xi1>, vector<1x8xf32>
      %cst_139 = arith.constant dense<0.000000e+00> : vector<1xf32>
      %283 = vector.multi_reduction <add>, %282, %cst_139 [1] : vector<1x8xf32> to vector<1xf32>
      %284 = vector.shape_cast %283 : vector<1xf32> to vector<1x1xf32>
      %285 = arith.index_cast %236 : i32 to index
      %286 = arith.index_cast %233 : i32 to index
      %287 = memref.load %arg21[%285, %286] : memref<8x8xf32, #tpu.memory_space<smem>>
      %288 = vector.broadcast %287 : f32 to vector<1x1xf32>
      %289 = arith.addf %284, %288 : vector<1x1xf32>
      %290 = vector.broadcast %231 : f32 to vector<1x1xf32>
      %291 = arith.mulf %290, %289 : vector<1x1xf32>
      %292 = arith.addf %arg31, %291 : vector<1x1xf32>
      %293 = vector.broadcast %231 : f32 to vector<1x8xf32>
      %294 = arith.mulf %293, %254 : vector<1x8xf32>
      %cst_140 = arith.constant 1.000000e+00 : f32
      %295 = arith.subf %cst_140, %231 : f32
      %296 = vector.broadcast %295 : f32 to vector<1x8xf32>
      %297 = arith.mulf %296, %arg27 : vector<1x8xf32>
      %298 = arith.addf %294, %297 : vector<1x8xf32>
      %299 = vector.broadcast %231 : f32 to vector<1x8xf32>
      %300 = arith.mulf %299, %271 : vector<1x8xf32>
      %cst_141 = arith.constant 1.000000e+00 : f32
      %301 = arith.subf %cst_141, %231 : f32
      %302 = vector.broadcast %301 : f32 to vector<1x8xf32>
      %303 = arith.mulf %302, %arg29 : vector<1x8xf32>
      %304 = arith.addf %300, %303 : vector<1x8xf32>
      %305 = vector.broadcast %230 : i32 to vector<1x8xi32>
      %306 = arith.muli %305, %278 : vector<1x8xi32>
      %c1_i32_142 = arith.constant 1 : i32
      %307 = arith.subi %c1_i32_142, %230 : i32
      %308 = vector.broadcast %307 : i32 to vector<1x8xi32>
      %309 = arith.muli %308, %135 : vector<1x8xi32>
      %310 = arith.addi %306, %309 : vector<1x8xi32>
      %c0_143 = arith.constant 0 : index
      %311 = arith.index_cast %arg26 : i32 to index
      %c0_144 = arith.constant 0 : index
      %312 = vector.load %arg23[%c0_143, %311, %c0_144] : memref<2x8x8xi32, #tpu.memory_space<vmem>>, vector<1x1x8xi32>
      %313 = vector.shape_cast %312 : vector<1x1x8xi32> to vector<1x8xi32>
      %314 = vector.shape_cast %310 : vector<1x8xi32> to vector<1x1x8xi32>
      tpu.vector_store %arg23[%c0_143, %311, %c0_144], %314 {strides = array<i32>} : memref<2x8x8xi32, #tpu.memory_space<vmem>>, vector<1x1x8xi32>,
      %c1_145 = arith.constant 1 : index
      %315 = arith.index_cast %arg26 : i32 to index
      %c0_146 = arith.constant 0 : index
      %316 = vector.load %arg25[%c1_145, %315, %c0_146] : memref<2x8x8xf32, #tpu.memory_space<vmem>>, vector<1x1x8xf32>
      %317 = vector.shape_cast %316 : vector<1x1x8xf32> to vector<1x8xf32>
      %c1_147 = arith.constant 1 : index
      %318 = arith.index_cast %arg26 : i32 to index
      %319 = memref.load %arg20[%c1_147, %318] : memref<2x8xi32, #tpu.memory_space<smem>>
      %320 = arith.sitofp %319 : i32 to f32
      %c1_148 = arith.constant 1 : index
      %321 = arith.index_cast %arg26 : i32 to index
      %322 = memref.load %arg19[%c1_148, %321] : memref<2x8xi32, #tpu.memory_space<smem>>
      %c1_i32_149 = arith.constant 1 : i32
      %323 = arith.subi %arg26, %c1_i32_149 : i32
      %c1_150 = arith.constant 1 : index
      %324 = arith.index_cast %323 : i32 to index
      %325 = memref.load %arg19[%c1_150, %324] : memref<2x8xi32, #tpu.memory_space<smem>>
      %326 = vector.broadcast %arg28 : vector<1x8xf32> to vector<8x8xf32>
      %327 = arith.addf %326, %134 : vector<8x8xf32>
      %cst_151 = arith.constant dense<0xFF800000> : vector<8xf32>
      %328 = vector.multi_reduction <maximumf>, %327, %cst_151 [1] : vector<8x8xf32> to vector<8xf32>
      %329 = vector.shape_cast %328 : vector<8xf32> to vector<8x1xf32>
      %330 = vector.broadcast %329 : vector<8x1xf32> to vector<8x8xf32>
      %331 = arith.subf %327, %330 : vector<8x8xf32>
      %332 = math.exp %331 : vector<8x8xf32>
      %cst_152 = arith.constant dense<0.000000e+00> : vector<8xf32>
      %333 = vector.multi_reduction <add>, %332, %cst_152 [1] : vector<8x8xf32> to vector<8xf32>
      %334 = vector.shape_cast %333 : vector<8xf32> to vector<8x1xf32>
      %335 = math.log %334 : vector<8x1xf32>
      %336 = arith.addf %329, %335 : vector<8x1xf32>
      %cst_153 = arith.constant 0.000000e+00 : f32
      %337 = vector.shape_cast %336 : vector<8x1xf32> to vector<8x1xf32>
      %338 = vector.broadcast %337 : vector<8x1xf32> to vector<8x8xf32>
      %339 = vector.broadcast %cst_153 : f32 to vector<8x8xf32>
      %340 = arith.select %141, %338, %339 : vector<8x8xi1>, vector<8x8xf32>
      %cst_154 = arith.constant dense<0.000000e+00> : vector<8xf32>
      %341 = vector.multi_reduction <add>, %340, %cst_154 [0] : vector<8x8xf32> to vector<8xf32>
      %342 = vector.shape_cast %341 : vector<8xf32> to vector<1x8xf32>
      %343 = arith.addf %342, %317 : vector<1x8xf32>
      %344 = vector.broadcast %arg30 : vector<1x8xf32> to vector<8x8xf32>
      %345 = arith.addf %344, %134 : vector<8x8xf32>
      %cst_155 = arith.constant dense<0xFF800000> : vector<8xf32>
      %346 = vector.multi_reduction <maximumf>, %345, %cst_155 [1] : vector<8x8xf32> to vector<8xf32>
      %347 = vector.shape_cast %346 : vector<8xf32> to vector<8x1xf32>
      %348 = vector.broadcast %347 : vector<8x1xf32> to vector<8x8xf32>
      %349 = arith.cmpf oge, %345, %348 : vector<8x8xf32>
      %cst_156 = arith.constant 8.000000e+00 : f32
      %350 = vector.broadcast %cst_156 : f32 to vector<8x8xf32>
      %351 = arith.select %349, %138, %350 : vector<8x8xi1>, vector<8x8xf32>
      %cst_157 = arith.constant dense<0x7F800000> : vector<8xf32>
      %352 = vector.multi_reduction <minimumf>, %351, %cst_157 [1] : vector<8x8xf32> to vector<8xf32>
      %353 = vector.shape_cast %352 : vector<8xf32> to vector<8x1xf32>
      %cst_158 = arith.constant 0.000000e+00 : f32
      %354 = vector.shape_cast %347 : vector<8x1xf32> to vector<8x1xf32>
      %355 = vector.broadcast %354 : vector<8x1xf32> to vector<8x8xf32>
      %356 = vector.broadcast %cst_158 : f32 to vector<8x8xf32>
      %357 = arith.select %141, %355, %356 : vector<8x8xi1>, vector<8x8xf32>
      %cst_159 = arith.constant dense<0.000000e+00> : vector<8xf32>
      %358 = vector.multi_reduction <add>, %357, %cst_159 [0] : vector<8x8xf32> to vector<8xf32>
      %359 = vector.shape_cast %358 : vector<8xf32> to vector<1x8xf32>
      %360 = arith.addf %359, %317 : vector<1x8xf32>
      %cst_160 = arith.constant 0.000000e+00 : f32
      %361 = vector.shape_cast %353 : vector<8x1xf32> to vector<8x1xf32>
      %362 = vector.broadcast %361 : vector<8x1xf32> to vector<8x8xf32>
      %363 = vector.broadcast %cst_160 : f32 to vector<8x8xf32>
      %364 = arith.select %141, %362, %363 : vector<8x8xi1>, vector<8x8xf32>
      %cst_161 = arith.constant dense<0.000000e+00> : vector<8xf32>
      %365 = vector.multi_reduction <add>, %364, %cst_161 [0] : vector<8x8xf32> to vector<8xf32>
      %366 = vector.shape_cast %365 : vector<8xf32> to vector<1x8xf32>
      %367 = arith.fptosi %366 : vector<1x8xf32> to vector<1x8xi32>
      %368 = vector.broadcast %322 : i32 to vector<1x8xi32>
      %369 = arith.cmpi eq, %135, %368 : vector<1x8xi32>
      %cst_162 = arith.constant 0.000000e+00 : f32
      %370 = vector.broadcast %cst_162 : f32 to vector<1x8xf32>
      %371 = arith.select %369, %317, %370 : vector<1x8xi1>, vector<1x8xf32>
      %cst_163 = arith.constant dense<0.000000e+00> : vector<1xf32>
      %372 = vector.multi_reduction <add>, %371, %cst_163 [1] : vector<1x8xf32> to vector<1xf32>
      %373 = vector.shape_cast %372 : vector<1xf32> to vector<1x1xf32>
      %374 = arith.index_cast %325 : i32 to index
      %375 = arith.index_cast %322 : i32 to index
      %376 = memref.load %arg21[%374, %375] : memref<8x8xf32, #tpu.memory_space<smem>>
      %377 = vector.broadcast %376 : f32 to vector<1x1xf32>
      %378 = arith.addf %373, %377 : vector<1x1xf32>
      %379 = vector.broadcast %320 : f32 to vector<1x1xf32>
      %380 = arith.mulf %379, %378 : vector<1x1xf32>
      %381 = arith.addf %arg32, %380 : vector<1x1xf32>
      %382 = vector.broadcast %320 : f32 to vector<1x8xf32>
      %383 = arith.mulf %382, %343 : vector<1x8xf32>
      %cst_164 = arith.constant 1.000000e+00 : f32
      %384 = arith.subf %cst_164, %320 : f32
      %385 = vector.broadcast %384 : f32 to vector<1x8xf32>
      %386 = arith.mulf %385, %arg28 : vector<1x8xf32>
      %387 = arith.addf %383, %386 : vector<1x8xf32>
      %388 = vector.broadcast %320 : f32 to vector<1x8xf32>
      %389 = arith.mulf %388, %360 : vector<1x8xf32>
      %cst_165 = arith.constant 1.000000e+00 : f32
      %390 = arith.subf %cst_165, %320 : f32
      %391 = vector.broadcast %390 : f32 to vector<1x8xf32>
      %392 = arith.mulf %391, %arg30 : vector<1x8xf32>
      %393 = arith.addf %389, %392 : vector<1x8xf32>
      %394 = vector.broadcast %319 : i32 to vector<1x8xi32>
      %395 = arith.muli %394, %367 : vector<1x8xi32>
      %c1_i32_166 = arith.constant 1 : i32
      %396 = arith.subi %c1_i32_166, %319 : i32
      %397 = vector.broadcast %396 : i32 to vector<1x8xi32>
      %398 = arith.muli %397, %135 : vector<1x8xi32>
      %399 = arith.addi %395, %398 : vector<1x8xi32>
      %c1_167 = arith.constant 1 : index
      %400 = arith.index_cast %arg26 : i32 to index
      %c0_168 = arith.constant 0 : index
      %401 = vector.load %arg23[%c1_167, %400, %c0_168] : memref<2x8x8xi32, #tpu.memory_space<vmem>>, vector<1x1x8xi32>
      %402 = vector.shape_cast %401 : vector<1x1x8xi32> to vector<1x8xi32>
      %403 = vector.shape_cast %399 : vector<1x8xi32> to vector<1x1x8xi32>
      tpu.vector_store %arg23[%c1_167, %400, %c0_168], %403 {strides = array<i32>} : memref<2x8x8xi32, #tpu.memory_space<vmem>>, vector<1x1x8xi32>,
      scf.yield %298, %387, %304, %393, %292, %381 : vector<1x8xf32>, vector<1x8xf32>, vector<1x8xf32>, vector<1x8xf32>, vector<1x1xf32>, vector<1x1xf32>
    }
    %c7_i32_98 = arith.constant 7 : i32
    %cst_99 = arith.constant dense<0xFF800000> : vector<1xf32>
    %176 = vector.multi_reduction <maximumf>, %175#0, %cst_99 [1] : vector<1x8xf32> to vector<1xf32>
    %177 = vector.shape_cast %176 : vector<1xf32> to vector<1x1xf32>
    %178 = vector.broadcast %177 : vector<1x1xf32> to vector<1x8xf32>
    %179 = arith.subf %175#0, %178 : vector<1x8xf32>
    %180 = math.exp %179 : vector<1x8xf32>
    %cst_100 = arith.constant dense<0.000000e+00> : vector<1xf32>
    %181 = vector.multi_reduction <add>, %180, %cst_100 [1] : vector<1x8xf32> to vector<1xf32>
    %182 = vector.shape_cast %181 : vector<1xf32> to vector<1x1xf32>
    %183 = math.log %182 : vector<1x1xf32>
    %184 = arith.addf %177, %183 : vector<1x1xf32>
    %185 = arith.subf %184, %175#4 : vector<1x1xf32>
    %c0_101 = arith.constant 0 : index
    %c0_102 = arith.constant 0 : index
    %c0_103 = arith.constant 0 : index
    %186 = vector.load %arg22[%c0_101, %c0_102, %c0_103] : memref<2x1x1xf32, #tpu.memory_space<vmem>>, vector<1x1x1xf32>
    %187 = vector.shape_cast %186 : vector<1x1x1xf32> to vector<1x1xf32>
    %188 = vector.shape_cast %185 : vector<1x1xf32> to vector<1x1x1xf32>
    tpu.vector_store %arg22[%c0_101, %c0_102, %c0_103], %188 {strides = array<i32>} : memref<2x1x1xf32, #tpu.memory_space<vmem>>, vector<1x1x1xf32>,
    %cst_104 = arith.constant dense<0xFF800000> : vector<1xf32>
    %189 = vector.multi_reduction <maximumf>, %175#2, %cst_104 [1] : vector<1x8xf32> to vector<1xf32>
    %190 = vector.shape_cast %189 : vector<1xf32> to vector<1x1xf32>
    %191 = vector.broadcast %190 : vector<1x1xf32> to vector<1x8xf32>
    %192 = arith.cmpf oge, %175#2, %191 : vector<1x8xf32>
    %cst_105 = arith.constant 8.000000e+00 : f32
    %193 = vector.broadcast %cst_105 : f32 to vector<1x8xf32>
    %194 = arith.select %192, %136, %193 : vector<1x8xi1>, vector<1x8xf32>
    %cst_106 = arith.constant dense<0x7F800000> : vector<1xf32>
    %195 = vector.multi_reduction <minimumf>, %194, %cst_106 [1] : vector<1x8xf32> to vector<1xf32>
    %196 = vector.shape_cast %195 : vector<1xf32> to vector<1x1xf32>
    %197 = arith.fptosi %196 : vector<1x1xf32> to vector<1x1xi32>
    %c0_107 = arith.constant 0 : index
    %c0_108 = arith.constant 0 : index
    %c0_109 = arith.constant 0 : index
    %198 = vector.load %arg24[%c0_107, %c0_108, %c0_109] : memref<2x1x1xi32, #tpu.memory_space<vmem>>, vector<1x1x1xi32>
    %199 = vector.shape_cast %198 : vector<1x1x1xi32> to vector<1x1xi32>
    %200 = vector.shape_cast %197 : vector<1x1xi32> to vector<1x1x1xi32>
    tpu.vector_store %arg24[%c0_107, %c0_108, %c0_109], %200 {strides = array<i32>} : memref<2x1x1xi32, #tpu.memory_space<vmem>>, vector<1x1x1xi32>,
    %cst_110 = arith.constant dense<0xFF800000> : vector<1xf32>
    %201 = vector.multi_reduction <maximumf>, %175#1, %cst_110 [1] : vector<1x8xf32> to vector<1xf32>
    %202 = vector.shape_cast %201 : vector<1xf32> to vector<1x1xf32>
    %203 = vector.broadcast %202 : vector<1x1xf32> to vector<1x8xf32>
    %204 = arith.subf %175#1, %203 : vector<1x8xf32>
    %205 = math.exp %204 : vector<1x8xf32>
    %cst_111 = arith.constant dense<0.000000e+00> : vector<1xf32>
    %206 = vector.multi_reduction <add>, %205, %cst_111 [1] : vector<1x8xf32> to vector<1xf32>
    %207 = vector.shape_cast %206 : vector<1xf32> to vector<1x1xf32>
    %208 = math.log %207 : vector<1x1xf32>
    %209 = arith.addf %202, %208 : vector<1x1xf32>
    %210 = arith.subf %209, %175#5 : vector<1x1xf32>
    %c1_112 = arith.constant 1 : index
    %c0_113 = arith.constant 0 : index
    %c0_114 = arith.constant 0 : index
    %211 = vector.load %arg22[%c1_112, %c0_113, %c0_114] : memref<2x1x1xf32, #tpu.memory_space<vmem>>, vector<1x1x1xf32>
    %212 = vector.shape_cast %211 : vector<1x1x1xf32> to vector<1x1xf32>
    %213 = vector.shape_cast %210 : vector<1x1xf32> to vector<1x1x1xf32>
    tpu.vector_store %arg22[%c1_112, %c0_113, %c0_114], %213 {strides = array<i32>} : memref<2x1x1xf32, #tpu.memory_space<vmem>>, vector<1x1x1xf32>,
    %cst_115 = arith.constant dense<0xFF800000> : vector<1xf32>
    %214 = vector.multi_reduction <maximumf>, %175#3, %cst_115 [1] : vector<1x8xf32> to vector<1xf32>
    %215 = vector.shape_cast %214 : vector<1xf32> to vector<1x1xf32>
    %216 = vector.broadcast %215 : vector<1x1xf32> to vector<1x8xf32>
    %217 = arith.cmpf oge, %175#3, %216 : vector<1x8xf32>
    %cst_116 = arith.constant 8.000000e+00 : f32
    %218 = vector.broadcast %cst_116 : f32 to vector<1x8xf32>
    %219 = arith.select %217, %136, %218 : vector<1x8xi1>, vector<1x8xf32>
    %cst_117 = arith.constant dense<0x7F800000> : vector<1xf32>
    %220 = vector.multi_reduction <minimumf>, %219, %cst_117 [1] : vector<1x8xf32> to vector<1xf32>
    %221 = vector.shape_cast %220 : vector<1xf32> to vector<1x1xf32>
    %222 = arith.fptosi %221 : vector<1x1xf32> to vector<1x1xi32>
    %c1_118 = arith.constant 1 : index
    %c0_119 = arith.constant 0 : index
    %c0_120 = arith.constant 0 : index
    %223 = vector.load %arg24[%c1_118, %c0_119, %c0_120] : memref<2x1x1xi32, #tpu.memory_space<vmem>>, vector<1x1x1xi32>
    %224 = vector.shape_cast %223 : vector<1x1x1xi32> to vector<1x1xi32>
    %225 = vector.shape_cast %222 : vector<1x1xi32> to vector<1x1x1xi32>
    tpu.vector_store %arg24[%c1_118, %c0_119, %c0_120], %225 {strides = array<i32>} : memref<2x1x1xi32, #tpu.memory_space<vmem>>, vector<1x1x1xi32>,
    return
  }
}

</mosaic_0001>

<bundles_post_ra>
// kernel: custom-call.4
= control target key start
LH: loop header
LB: loop body
LE: loop exit
PB: predicated region body
PF: predicated region fallthrough
CT: control target
= control target key end

     0   :  { %s6_s0 = inlined_call_operand.vmem [shape: s32[8,2], index: 0, kind: output, shape index: {}]  }

// kernel: syn_model_forward.1
= control target key start
LH: loop header
LB: loop body
LE: loop exit
PB: predicated region body
PF: predicated region fallthrough
CT: control target
= control target key end

     0   :  { %s2251_s0 = inlined_call_operand.vmem [shape: f32[16,32], index: 0, kind: input, shape index: {}]   ;;  %s2252_s1 = inlined_call_operand.vmem [shape: f32[2,1,8], index: 1, kind: input, shape index: {}]   ;;  %s2253_s2 = inlined_call_operand.vmem [shape: f32[8,8], index: 2, kind: input, shape index: {}]   ;;  %s2254_s3 = inlined_call_operand.vmem [shape: f32[32,64], index: 3, kind: input, shape index: {}]   ;;  %s2255_s4 = inlined_call_operand.vmem [shape: f32[1,64], index: 4, kind: input, shape index: {}]   ;;  %s2256_s5 = inlined_call_operand.vmem [shape: f32[32,8], index: 5, kind: input, shape index: {}]   ;;  %s2257_s6 = inlined_call_operand.vmem [shape: f32[1,8], index: 6, kind: input, shape index: {}]   ;;  %s2258_s7 = inlined_call_operand.vmem [shape: f32[32,32], index: 7, kind: input, shape index: {}]   ;;  %s2259_s8 = inlined_call_operand.vmem [shape: f32[1,32], index: 8, kind: input, shape index: {}]   ;;  %s2260_s9 = inlined_call_operand.vmem [shape: f32[1,32], index: 9, kind: input, shape index: {}]   ;;  %s2261_s10 = inlined_call_operand.vmem [shape: f32[1,32], index: 10, kind: input, shape index: {}]   ;;  %s2262_s11 = inlined_call_operand.vmem [shape: f32[32,64], index: 11, kind: input, shape index: {}]   ;;  %s2263_s12 = inlined_call_operand.vmem [shape: f32[1,64], index: 12, kind: input, shape index: {}]   ;;  %s2264_s13 = inlined_call_operand.vmem [shape: f32[64,32], index: 13, kind: input, shape index: {}]   ;;  %s2265_s14 = inlined_call_operand.vmem [shape: f32[1,32], index: 14, kind: input, shape index: {}]   ;;  %s2266_s15 = inlined_call_operand.vmem [shape: f32[1,32], index: 15, kind: input, shape index: {}]   ;;  %s2267_s16 = inlined_call_operand.vmem [shape: f32[1,32], index: 16, kind: input, shape index: {}]   ;;  %s2268_s17 = inlined_call_operand.vmem [shape: f32[32,8], index: 17, kind: input, shape index: {}]   ;;  %s2269_s18 = inlined_call_operand.vmem [shape: f32[1,8], index: 18, kind: input, shape index: {}]   ;;  %s2270_s19 = inlined_call_operand.vmem [shape: s32[2,8], index: 19, kind: input, shape index: {}]   ;;  %s2271_s20 = inlined_call_operand.vmem [shape: s32[2,8], index: 20, kind: input, shape index: {}]   ;;  %s2272_s21 = inlined_call_operand.vmem [shape: f32[8,8], index: 21, kind: input, shape index: {}]   ;;  %s2273_s22 = inlined_call_operand.vmem [shape: f32[2,1,1], index: 22, kind: output, shape index: {0}]   ;;  %s2274_s23 = inlined_call_operand.vmem [shape: s32[2,8,8], index: 23, kind: output, shape index: {1}]   ;;  %s2275_s24 = inlined_call_operand.vmem [shape: s32[2,1,1], index: 24, kind: output, shape index: {2}]  }
   0x1   :  { %2281 = sst [smem:[#allocation10_spill]] %s2251_s0 }
   0x2   :  { %2282 = sst [smem:[#allocation11_spill]] %s2252_s1 }
   0x3   :  { %2283 = sst [smem:[#allocation12_spill]] %s2253_s2 }
   0x4   :  { %2284 = sst [smem:[#allocation13_spill]] %s2254_s3 }
   0x5   :  { %2285 = sst [smem:[#allocation14_spill]] %s2255_s4 }
   0x6   :  { %2286 = sst [smem:[#allocation15_spill]] %s2256_s5 }
   0x7   :  { %2287 = sst [smem:[#allocation16_spill]] %s2257_s6 }
   0x8   :  { %2288 = sst [smem:[#allocation17_spill]] %s2258_s7 }
   0x9   :  { %2289 = sst [smem:[#allocation18_spill]] %s2259_s8 }
   0xa   :  { %30 = vsyncpa [#allocation4], 0 }
   0xb   :  { %31 = vsyncpa [#allocation6], 0  ;;  %s86_s27 = sshll.u32 %s2271_s20, 4  ;;  %s76_s2 = sshll.u32 %s2270_s19, 4  ;;  %s87_s27 = int_to_ptr.vmem [resolvable:$true] %s86_s27  ;;  %s77_s2 = int_to_ptr.vmem [resolvable:$true] %s76_s2 }
   0xc   :  { %s1594_s29 = scalar_lea.vmem %s87_s27, 32  ;;  %p1599_p1 = scmp.lt.s32.totalorder %s87_s27, %s87_s27 }
   0xd   :  { %p1595_p0 = scmp.ne.s32.totalorder %s87_s27, %s1594_s29  ;;  %p1600_p2 = scmp.lt.s32.totalorder %s1594_s29, %s1594_s29 }
   0xf   :  { %p1601_p3 = por %p1600_p2, %p1599_p1 }
  0x11   :  { %p1602_p4 = pnand %p1601_p3, %p1595_p0 }
  0x13   :  { %1605 = shalt.err (!%p1602_p4)
}
  0x14   :  { %s1690_s0 = smov [#allocation5]   ;;  %s1606_s7 = scalar_lea.vmem %s77_s2, 32 }
  0x15   :  { %89 = dma.vmem_to_smem %s87_s27, 32, %s1690_s0, [#allocation6]  }
  0x16   :  { %p1607_p5 = scmp.ne.s32.totalorder %s77_s2, %s1606_s7  ;;  %p1611_p6 = scmp.lt.s32.totalorder %s77_s2, %s77_s2 }
  0x17   :  { %p1612_p7 = scmp.lt.s32.totalorder %s1606_s7, %s1606_s7 }
  0x19   :  { %p1613_p8 = por %p1612_p7, %p1611_p6 }
  0x1b   :  { %p1614_p9 = pnand %p1613_p8, %p1607_p5 }
  0x1d   :  { %1617 = shalt.err (!%p1614_p9)
}
  0x1e   :  { %s1691_s20 = smov [#allocation3]   ;;  %s96_s3 = sshll.u32 %s2272_s21, 4  ;;  %s97_s3 = int_to_ptr.vmem [resolvable:$true] %s96_s3 }
  0x1f   :  { %79 = dma.vmem_to_smem %s77_s2, 32, %s1691_s20, [#allocation4]  }
  0x20   :  { %s1618_s25 = scalar_lea.vmem %s97_s3, 128  ;;  %p1623_p11 = scmp.lt.s32.totalorder %s97_s3, %s97_s3 }
  0x21   :  { %p1619_p10 = scmp.ne.s32.totalorder %s97_s3, %s1618_s25  ;;  %p1624_p12 = scmp.lt.s32.totalorder %s1618_s25, %s1618_s25 }
  0x23   :  { %p1625_p13 = por %p1624_p12, %p1623_p11 }
  0x25   :  { %p1626_p0 = pnand %p1625_p13, %p1619_p10 }
  0x27   :  { %1629 = shalt.err (!%p1626_p0)
}
  0x28   :  { %s1692_s8 = smov [#allocation7]  }
  0x29   :  { %99 = dma.vmem_to_smem %s97_s3, 128, %s1692_s8, [#allocation6]  }
  0x2a   :  { %1658 = dma.done.wait [#allocation4], 32  }
  0x2b   :  { %1659 = vsyncadd [#allocation4], 4294967264 }
  0x2c   :  { %1660 = dma.done.wait [#allocation6], 160  }
  0x2d   :  { %1661 = vsyncadd [#allocation6], 4294967136 }
  0x2e   :  { %109 = sfence }
  0x2f   :  { %s2290_s5 = sld [smem:[#allocation13_spill]]  ;;  %vm123_vm0 = vcmask 261120   ;;  %v303_v17 = vlaneseq  ;;  %vm309_vm2 = vcmask 64512   ;;  %v1693_v40 = vmov 0.0   ;;  %s2037_s21 = smov 1  }
  0x30   :  { %s2291_s6 = sld [smem:[#allocation10_spill]]  ;;  %vm1695_vm3 = vmmov 0   ;;  %vm745_vm4 = vcmask 523264   ;;  %vm982_vm5 = vcmask 57344  }
  0x31   :  { %s2292_s25 = sld [smem:[#allocation15_spill]]  ;;  %v304_v18 = vshrl.u32 %v303_v17, 7  ;;  %v1873_v19 = vand.u32 127, %v303_v17 }
  0x32   :  { %s2296_s0 = sld [smem:[#allocation11_spill]] }
  0x33   :  { %v1876_v20 = vcvt.s32.f32 %v1873_v19  ;;  %vm1879_vm1 = vcmp.eq.s32.totalorder %v304_v18, %v1873_v19  ;;  %v1889_v27 = vsub.s32 0, %v304_v18  ;;  %s2297_s3 = sld [smem:[#allocation16_spill]]  ;;  %988 = vst.msk [vmem:[%s2274_s23] sm:$0x1] %vm982_vm5, %v1873_v19  ;;  %1350 = vst.msk [vmem:[%s2274_s23 + $0x8] sm:$0x1] %vm982_vm5, %v1873_v19 }
  0x34   :  { %s2298_s1 = sld [smem:[#allocation17_spill]] }
  0x35   :  { %v115_v0 = vld [vmem:[%s2290_s5 + $0x18] sm:$0xff]  ;;  %v114_v1 = vld [vmem:[%s2290_s5 + $0x10] sm:$0xff]  ;;  %v113_v3 = vld [vmem:[%s2290_s5 + $0x8] sm:$0xff]  ;;  %s1349_s8 = sld [smem:[#allocation5 + $0x80]] }
  0x36   :  { %1408 = vmatprep.subr.mxu0 %v115_v0  ;;  %v1839_v2 = vld [vmem:[%s2291_s6] sm:$0xff]  ;;  %v1852_v5 = vld [vmem:[%s2291_s6 + $0x8] sm:$0xff]  ;;  %s2293_s6 = sld [smem:[#allocation14_spill]] }
  0x37   :  { %1409 = vmatpush3.msra.mxu0 %v115_v0  ;;  %1416 = vmatprep.mubr.msk.f32.mxu0 %vm123_vm0, %v1839_v2  ;;  %v112_v4 = vld [vmem:[%s2290_s5] sm:$0xff]  ;;  %v210_v6 = vld [vmem:[%s2292_s25 + $0x18] sm:$0xff]  ;;  %v209_v7 = vld [vmem:[%s2292_s25 + $0x10] sm:$0xff]  ;;  %s977_s4 = sld [smem:[#allocation5]] }
  0x38   :  { %1410 = vmatprep.subr.mxu0 %v114_v1  ;;  %1419 = vmatprep.subr.mxu1 %v210_v6  ;;  %v208_v8 = vld [vmem:[%s2292_s25 + $0x8] sm:$0xff]  ;;  %v207_v9 = vld [vmem:[%s2292_s25] sm:$0xff]  ;;  %s1694_s25 = smov 96  }
  0x39   :  { %1411 = vmatpush3.msra.mxu0 %v114_v1  ;;  %1420 = vmatpush3.msra.mxu1 %v210_v6  ;;  %v299_v22 = vld [vmem:[%s2296_s0] sm:$0x1]  ;;  %v1329_v23 = vld [vmem:[%s2296_s0 + $0x1] sm:$0x1]  ;;  %s2299_s0 = sld [smem:[#allocation18_spill]] }
  0x3a   :  { %1412 = vmatprep.subr.mxu0 %v113_v3  ;;  %1421 = vmatprep.subr.mxu1 %v209_v7  ;;  %v1327_v24 = vadd.f32 -1.0, %v299_v22  ;;  %v1330_v25 = vadd.f32 -1.0, %v1329_v23  ;;  %v1324_v30 = vld [vmem:[%s2297_s3] ss:$0 sm:$0xff]  ;;  %v500_v52 = vld [vmem:[%s2298_s1 + $0x18] sm:$0xff]  ;;  %v499_v53 = vld [vmem:[%s2298_s1 + $0x10] sm:$0xff] }
  0x3b   :  { %1413 = vmatpush3.msra.mxu0 %v113_v3  ;;  %1422 = vmatpush3.msra.mxu1 %v209_v7  ;;  %v498_v61 = vld [vmem:[%s2298_s1 + $0x8] sm:$0xff]  ;;  %v497_v62 = vld [vmem:[%s2298_s1] sm:$0xff]  ;;  %s992_s1 = scvt.s32.f32 %s1349_s8 }
  0x3c   :  { %1414 = vmatprep.subr.mxu0 %v112_v4  ;;  %1423 = vmatprep.subr.mxu1 %v208_v8  ;;  %v1321_v10 = vld [vmem:[%s2293_s6] ss:$0 sm:$0xff]  ;;  %v301_v26 = vmul.f32 1e+09, %v1327_v24  ;;  %v401_v28 = vmul.f32 1e+09, %v1330_v25 }
  0x3d   :  { %1415 = vmatpush3.msra.mxu0 %v112_v4  ;;  %1424 = vmatpush3.msra.mxu1 %v208_v8  ;;  %s978_s5 = scvt.s32.f32 %s977_s4 }
  0x3e   :  { %1417 = vmatmul.mubr.msk.f32.vlgmr.msra.gmra.mxu0 %vm123_vm0, %v1852_v5  ;;  %1425 = vmatprep.subr.mxu1 %v207_v9  ;;  %v306_v31 = vrot.slane %v301_v26, %v1889_v27  ;;  %v406_v35 = vrot.slane %v401_v28, %v1889_v27  ;;  %v638_v26 = vld [vmem:[%s2262_s11 + $0x10] sm:$0xff]  ;;  %v637_v28 = vld [vmem:[%s2262_s11 + $0x8] sm:$0xff] }
  0x3f   :  { %1426 = vmatpush3.msra.mxu1 %v207_v9  ;;  %1440 = vmatprep.subr.mxu0 %v500_v52  ;;  %v1332_v4 = vld [vmem:[%s2299_s0] ss:$0 sm:$0xff] }
  0x40   :  { %1430 = vmatprep.subr.mxu1 %v1693_v40  ;;  %1441 = vmatpush3.msra.mxu0 %v500_v52  ;;  %v731_v52 = vld [vmem:[%s2264_s13 + $0x8] sm:$0xff] }
  0x41   :  { %1442 = vmatprep.subr.mxu0 %v499_v53 }
  0x42   :  { %1443 = vmatpush3.msra.mxu0 %v499_v53  ;;  %v730_v53 = vld [vmem:[%s2264_s13] sm:$0xff] }
  0x43   :  { %1444 = vmatprep.subr.mxu0 %v498_v61 }
  0x44   :  { %1445 = vmatpush3.msra.mxu0 %v498_v61  ;;  %v1340_v61 = vld [vmem:[%s2265_s14] ss:$0 sm:$0xff] }
  0x45   :  { %1446 = vmatprep.subr.mxu0 %v497_v62 }
  0x46   :  { %1447 = vmatpush3.msra.mxu0 %v497_v62 }
  0xfe   :  { %v1418_v11 = vpop.f32.mrf.mxu0 }
  0xff   :  { %v202_v12 = vadd.f32 %v1418_v11, %v1321_v10 }
 0x100   :  { %v196_v13 = vpop.f32.mrf.mxu0 }
 0x101   :  { %v197_v14 = vadd.f32 %v1321_v10, %v196_v13  ;;  %v206_v16 = vmax.f32 %v202_v12, 0.0 }
 0x103   :  { %v205_v15 = vmax.f32 %v197_v14, 0.0 }
 0x105   :  { %1427 = vmatprep.mubr.msk.f32.mxu1 %vm123_vm0, %v205_v15 }
 0x106   :  { %1428 = vmatmul.mubr.msk.f32.vlgmr.msra.gmra.mxu1 %vm123_vm0, %v206_v16 }
 0x107   :  { %1432 = vmatprep.mubr.msk.f32.mxu1 %vm1695_vm3, %v1693_v40 }
 0x1c6   :  { %v1429_v29 = vpop.f32.mrf.mxu1 }
 0x1c7   :  { %v296_v33 = vadd.f32 %v1429_v29, %v1324_v30  ;;  %v636_v29 = vld [vmem:[%s2262_s11] sm:$0xff] }
 0x1c8   :  { %v290_v32 = vpop.f32.mrf.mxu1 }
 0x1c9   :  { %v291_v34 = vadd.f32 %v1324_v30, %v290_v32  ;;  %v408_v38 = vadd.f32 %v406_v35, %v296_v33  ;;  %v737_v30 = vld [vmem:[%s2264_s13 + $0x38] sm:$0xff]  ;;  %v735_v32 = vld [vmem:[%s2264_s13 + $0x28] sm:$0xff]  ;;  %v734_v33 = vld [vmem:[%s2264_s13 + $0x20] sm:$0xff] }
 0x1ca   :  { %1462 = vmatprep.subr.mxu0 %v737_v30 }
 0x1cb   :  { %v308_v36 = vadd.f32 %v306_v31, %v291_v34  ;;  %v409_v39 = vsel %vm309_vm2, %v408_v38, -inf  ;;  %v736_v31 = vld [vmem:[%s2264_s13 + $0x30] sm:$0xff] }
 0x1cd   :  { %v310_v37 = vsel %vm309_vm2, %v308_v36, -inf }
 0x1ce   :  { %311 = vmax.xlane.f32.xlu0 %v310_v37 }
 0x1d2   :  { %410 = vmax.xlane.f32.xlu0 %v409_v39 }
 0x1e8   :  { %322 = vrot.lane.b32.xlu0 %v197_v14, %s1694_s25 }
 0x257   :  { %v312_v41 = vpop.xlane.xlu0 %311 }
 0x258   :  { %v313_v42 = vsub.f32 %v308_v36, %v312_v41  ;;  %v1335_v41 = vld [vmem:[%s2260_s9] ss:$0 sm:$0xff] }
 0x25a   :  { %v314_v45 = vmul.f32 1.442695, %v313_v42 }
 0x25b   :  { %v411_v43 = vpop.xlane.xlu0 %410 }
 0x25c   :  { %v412_v44 = vsub.f32 %v408_v38, %v411_v43 }
 0x25e   :  { %v413_v46 = vmul.f32 1.442695, %v412_v44 }
 0x25f   :  { %v323_v47 = vpop.permute.xlu0 %322 }
 0x260   :  { %1562 = vpow2.f32 %v413_v46  ;;  %1431 = vmatpush3.msra.mxu1 %v323_v47  ;;  %v1336_v46 = vld [vmem:[%s2261_s10] ss:$0 sm:$0xff]  ;;  %s976_s10 = sld [smem:[#allocation3]] }
 0x261   :  { %1435 = vmatprep.subr.mxu1 %v1693_v40  ;;  %1564 = vpow2.f32 %v314_v45 }
 0x26d   :  { %v1563_v48 = vpop.eup %1562 }
 0x26e   :  { %v415_v49 = vsel %vm309_vm2, %v1563_v48, 0.0  ;;  %v1565_v50 = vpop.eup %1564 }
 0x26f   :  { %416 = vadd.xlane.f32.xlu1 %v415_v49  ;;  %v316_v51 = vsel %vm309_vm2, %v1565_v50, 0.0 }
 0x273   :  { %317 = vadd.xlane.f32.xlu1 %v316_v51  ;;  %v732_v51 = vld [vmem:[%s2264_s13 + $0x10] sm:$0xff] }
 0x284   :  { %421 = vrot.lane.b32.xlu1 %v202_v12, %s1694_s25  ;;  %s2300_s25 = sld [smem:[#allocation12_spill]] }
 0x2f8   :  { %v417_v54 = vpop.xlane.xlu1 %416 }
 0x2fc   :  { %v318_v55 = vpop.xlane.xlu1 %317 }
 0x2fd   :  { %1566 = vrcp.f32 %v318_v55 }
 0x2fe   :  { %1568 = vrcp.f32 %v417_v54  ;;  %v1337_v54 = vld [vmem:[%s2263_s12] ss:$0 sm:$0xff] }
 0x300   :  { %v422_v59 = vpop.permute.xlu1 %421 }
 0x30a   :  { %v1567_v56 = vpop.eup %1566 }
 0x30b   :  { %v320_v57 = vmul.f32 %v1567_v56, %v1565_v50  ;;  %v1569_v58 = vpop.eup %1568  ;;  %v733_v50 = vld [vmem:[%s2264_s13 + $0x18] sm:$0xff] }
 0x30c   :  { %v419_v60 = vmul.f32 %v1569_v58, %v1563_v48 }
 0x30d   :  { %1433 = vmatmul.mubr.msk.f32.vlgmr.msra.gmra.mxu1 %vm309_vm2, %v320_v57 }
 0x30e   :  { %1436 = vmatpush3.msra.mxu1 %v422_v59  ;;  %1437 = vmatprep.mubr.msk.f32.mxu1 %vm1695_vm3, %v1693_v40 }
 0x311   :  { %1438 = vmatmul.mubr.msk.f32.vlgmr.msra.gmra.mxu1 %vm309_vm2, %v419_v60 }
 0x3cd   :  { %v394_v63 = vpop.f32.mrf.mxu1 }
 0x3ce   :  { %1448 = vmatprep.mubr.msk.f32.mxu0 %vm123_vm0, %v394_v63 }
 0x3cf   :  { %v1434_v0 = vpop.f32.mrf.mxu1 }
 0x3d1   :  { %v493_v1 = vpop.f32.mrf.mxu1 }
 0x3d2   :  { %1449 = vmatmul.mubr.msk.f32.vlgmr.msra.gmra.mxu0 %vm123_vm0, %v493_v1 }
 0x3d3   :  { %v1439_v3 = vpop.f32.mrf.mxu1  ;;  %1463 = vmatpush3.msra.mxu0 %v737_v30 }
 0x3d4   :  { %1464 = vmatprep.subr.mxu0 %v736_v31 }
 0x3d5   :  { %1465 = vmatpush3.msra.mxu0 %v736_v31  ;;  %v1343_v31 = vld [vmem:[%s2266_s15] ss:$0 sm:$0xff] }
 0x3d6   :  { %1466 = vmatprep.subr.mxu0 %v735_v32 }
 0x3d7   :  { %1467 = vmatpush3.msra.mxu0 %v735_v32 }
 0x3d8   :  { %1468 = vmatprep.subr.mxu0 %v734_v33 }
 0x3d9   :  { %1469 = vmatpush3.msra.mxu0 %v734_v33 }
 0x3da   :  { %1470 = vmatprep.subr.mxu0 %v733_v50 }
 0x3db   :  { %1471 = vmatpush3.msra.mxu0 %v733_v50 }
 0x3dc   :  { %1472 = vmatprep.subr.mxu0 %v732_v51 }
 0x3dd   :  { %1473 = vmatpush3.msra.mxu0 %v732_v51 }
 0x3de   :  { %1474 = vmatprep.subr.mxu0 %v731_v52 }
 0x3df   :  { %1475 = vmatpush3.msra.mxu0 %v731_v52 }
 0x3e0   :  { %1476 = vmatprep.subr.mxu0 %v730_v53 }
 0x3e1   :  { %1477 = vmatpush3.msra.mxu0 %v730_v53  ;;  %v2023_v53 = vld [vmem:[%s2300_s25] sm:$0xff] }
 0x492   :  { %v1450_v6 = vpop.f32.mrf.mxu0 }
 0x493   :  { %v586_v7 = vadd.f32 %v1450_v6, %v1332_v4 }
 0x494   :  { %v580_v8 = vpop.f32.mrf.mxu0 }
 0x495   :  { %v581_v9 = vadd.f32 %v1332_v4, %v580_v8  ;;  %v590_v10 = vadd.f32 %v586_v7, %v1852_v5 }
 0x497   :  { %v596_v11 = vsel %vm123_vm0, %v590_v10, 0.0  ;;  %v589_v12 = vadd.f32 %v581_v9, %v1839_v2  ;;  %v639_v2 = vld [vmem:[%s2262_s11 + $0x18] sm:$0xff] }
 0x498   :  { %597 = vadd.xlane.f32.xlu0 %v596_v11  ;;  %1451 = vmatprep.subr.mxu1 %v639_v2 }
 0x499   :  { %v593_v13 = vsel %vm123_vm0, %v589_v12, 0.0  ;;  %1452 = vmatpush3.msra.mxu1 %v639_v2 }
 0x49a   :  { %594 = vadd.xlane.f32.xlu1 %v593_v13  ;;  %1453 = vmatprep.subr.mxu1 %v638_v26 }
 0x49b   :  { %1454 = vmatpush3.msra.mxu1 %v638_v26 }
 0x49c   :  { %1455 = vmatprep.subr.mxu1 %v637_v28 }
 0x49d   :  { %1456 = vmatpush3.msra.mxu1 %v637_v28 }
 0x49e   :  { %1457 = vmatprep.subr.mxu1 %v636_v29 }
 0x49f   :  { %1458 = vmatpush3.msra.mxu1 %v636_v29 }
 0x521   :  { %v598_v14 = vpop.xlane.xlu0 %597 }
 0x522   :  { %v601_v15 = vmul.f32 0.03125, %v598_v14 }
 0x523   :  { %v595_v16 = vpop.xlane.xlu1 %594 }
 0x524   :  { %v603_v17 = vsub.f32 %v590_v10, %v601_v15  ;;  %v600_v18 = vmul.f32 0.03125, %v595_v16 }
 0x526   :  { %v602_v22 = vsub.f32 %v589_v12, %v600_v18  ;;  %v605_v23 = vmul.f32 %v603_v17, %v603_v17  ;;  %v876_v18 = vld [vmem:[%s2268_s17 + $0x18] sm:$0xff] }
 0x527   :  { %1481 = vmatprep.subr.mxu1 %v876_v18 }
 0x528   :  { %v609_v24 = vsel %vm123_vm0, %v605_v23, 0.0  ;;  %v604_v25 = vmul.f32 %v602_v22, %v602_v22  ;;  %v874_v23 = vld [vmem:[%s2268_s17 + $0x8] sm:$0xff] }
 0x529   :  { %610 = vadd.xlane.f32.xlu1 %v609_v24  ;;  %v873_v24 = vld [vmem:[%s2268_s17] sm:$0xff] }
 0x52a   :  { %v606_v5 = vsel %vm123_vm0, %v604_v25, 0.0 }
 0x52b   :  { %607 = vadd.xlane.f32.xlu0 %v606_v5 }
 0x5b2   :  { %v611_v34 = vpop.xlane.xlu1 %610 }
 0x5b3   :  { %v613_v35 = vmul.f32 0.03125, %v611_v34 }
 0x5b4   :  { %v608_v36 = vpop.xlane.xlu0 %607 }
 0x5b5   :  { %v615_v37 = vadd.f32 1e-05, %v613_v35  ;;  %v612_v38 = vmul.f32 0.03125, %v608_v36  ;;  %v1344_v36 = vld [vmem:[%s2267_s16] ss:$0 sm:$0xff]  ;;  %s1348_s16 = sld [smem:[#allocation3 + $0x80]] }
 0x5b7   :  { %1570 = vrsqrt.f32 %v615_v37  ;;  %v614_v39 = vadd.f32 1e-05, %v612_v38 }
 0x5b9   :  { %1572 = vrsqrt.f32 %v614_v39 }
 0x5c4   :  { %v1571_v40 = vpop.eup %1570 }
 0x5c5   :  { %v619_v42 = vmul.f32 %v1571_v40, %v603_v17  ;;  %v1345_v40 = vld [vmem:[%s2269_s18] ss:$0 sm:$0xff] }
 0x5c6   :  { %v1573_v43 = vpop.eup %1572 }
 0x5c7   :  { %v618_v44 = vmul.f32 %v1573_v43, %v602_v22  ;;  %v627_v45 = vmul.f32 %v1335_v41, %v619_v42  ;;  %v875_v22 = vld [vmem:[%s2268_s17 + $0x10] sm:$0xff] }
 0x5c9   :  { %v626_v47 = vmul.f32 %v1335_v41, %v618_v44  ;;  %v635_v49 = vadd.f32 %v1336_v46, %v627_v45  ;;  %v993_v45 = vstv %s1348_s16 }
 0x5ca   :  { %vm994_vm6 = vcmp.eq.s32.totalorder %v1873_v19, %v993_v45 }
 0x5cb   :  { %v634_v48 = vadd.f32 %v1336_v46, %v626_v47  ;;  %v979_v46 = vstv %s976_s10 }
 0x5cc   :  { %vm980_vm7 = vcmp.eq.s32.totalorder %v1873_v19, %v979_v46 }
 0x5cd   :  { %1459 = vmatprep.mubr.msk.f32.mxu1 %vm123_vm0, %v634_v48 }
 0x5ce   :  { %1460 = vmatmul.mubr.msk.f32.vlgmr.msra.gmra.mxu1 %vm123_vm0, %v635_v49 }
 0x5cf   :  { %1482 = vmatpush3.msra.mxu1 %v876_v18 }
 0x5d0   :  { %1483 = vmatprep.subr.mxu1 %v875_v22 }
 0x5d1   :  { %1484 = vmatpush3.msra.mxu1 %v875_v22 }
 0x5d2   :  { %1485 = vmatprep.subr.mxu1 %v874_v23 }
 0x5d3   :  { %1486 = vmatpush3.msra.mxu1 %v874_v23 }
 0x5d4   :  { %1487 = vmatprep.subr.mxu1 %v873_v24 }
 0x5d5   :  { %1488 = vmatpush3.msra.mxu1 %v873_v24 }
 0x68e   :  { %v1461_v55 = vpop.f32.mrf.mxu1 }
 0x68f   :  { %v725_v56 = vadd.f32 %v1461_v55, %v1337_v54 }
 0x690   :  { %v719_v57 = vpop.f32.mrf.mxu1 }
 0x691   :  { %v720_v58 = vadd.f32 %v1337_v54, %v719_v57  ;;  %v729_v60 = vmax.f32 %v725_v56, 0.0  ;;  %v999_v54 = vstv %s992_s1  ;;  %v986_v56 = vstv %s978_s5 }
 0x693   :  { %v728_v59 = vmax.f32 %v720_v58, 0.0 }
 0x695   :  { %1478 = vmatprep.mubr.msk.f32.mxu0 %vm745_vm4, %v728_v59 }
 0x696   :  { %1479 = vmatmul.mubr.msk.f32.vlgmr.msra.gmra.mxu0 %vm745_vm4, %v729_v60 }
 0x756   :  { %v1480_v62 = vpop.f32.mrf.mxu0 }
 0x757   :  { %v824_v63 = vadd.f32 %v1480_v62, %v1340_v61 }
 0x758   :  { %v818_v0 = vpop.f32.mrf.mxu0 }
 0x759   :  { %v819_v1 = vadd.f32 %v1340_v61, %v818_v0  ;;  %v828_v3 = vadd.f32 %v824_v63, %v635_v49 }
 0x75b   :  { %v834_v4 = vsel %vm123_vm0, %v828_v3, 0.0  ;;  %v827_v6 = vadd.f32 %v819_v1, %v634_v48 }
 0x75c   :  { %835 = vadd.xlane.f32.xlu1 %v834_v4 }
 0x75d   :  { %v831_v7 = vsel %vm123_vm0, %v827_v6, 0.0 }
 0x75e   :  { %832 = vadd.xlane.f32.xlu0 %v831_v7 }
 0x7e5   :  { %v836_v8 = vpop.xlane.xlu1 %835 }
 0x7e6   :  { %v838_v9 = vmul.f32 0.03125, %v836_v8 }
 0x7e7   :  { %v833_v10 = vpop.xlane.xlu0 %832 }
 0x7e8   :  { %v840_v11 = vsub.f32 %v828_v3, %v838_v9  ;;  %v837_v12 = vmul.f32 0.03125, %v833_v10 }
 0x7ea   :  { %v839_v13 = vsub.f32 %v827_v6, %v837_v12  ;;  %v842_v14 = vmul.f32 %v840_v11, %v840_v11 }
 0x7ec   :  { %v846_v15 = vsel %vm123_vm0, %v842_v14, 0.0  ;;  %v841_v16 = vmul.f32 %v839_v13, %v839_v13 }
 0x7ed   :  { %847 = vadd.xlane.f32.xlu1 %v846_v15 }
 0x7ee   :  { %v843_v17 = vsel %vm123_vm0, %v841_v16, 0.0 }
 0x7ef   :  { %844 = vadd.xlane.f32.xlu0 %v843_v17 }
 0x876   :  { %v848_v25 = vpop.xlane.xlu1 %847 }
 0x877   :  { %v850_v5 = vmul.f32 0.03125, %v848_v25 }
 0x878   :  { %v845_v2 = vpop.xlane.xlu0 %844 }
 0x879   :  { %v852_v26 = vadd.f32 1e-05, %v850_v5  ;;  %v849_v28 = vmul.f32 0.03125, %v845_v2 }
 0x87b   :  { %1574 = vrsqrt.f32 %v852_v26  ;;  %v851_v29 = vadd.f32 1e-05, %v849_v28 }
 0x87d   :  { %1576 = vrsqrt.f32 %v851_v29 }
 0x888   :  { %v1575_v30 = vpop.eup %1574 }
 0x889   :  { %v856_v32 = vmul.f32 %v1575_v30, %v840_v11 }
 0x88a   :  { %v1577_v33 = vpop.eup %1576 }
 0x88b   :  { %v855_v34 = vmul.f32 %v1577_v33, %v839_v13  ;;  %v864_v35 = vmul.f32 %v1343_v31, %v856_v32 }
 0x88d   :  { %v863_v37 = vmul.f32 %v1343_v31, %v855_v34  ;;  %v872_v39 = vadd.f32 %v1344_v36, %v864_v35 }
 0x88f   :  { %v871_v38 = vadd.f32 %v1344_v36, %v863_v37 }
 0x891   :  { %1489 = vmatprep.mubr.msk.f32.mxu1 %vm123_vm0, %v871_v38 }
 0x892   :  { %1490 = vmatmul.mubr.msk.f32.vlgmr.msra.gmra.mxu1 %vm123_vm0, %v872_v39 }
 0x952   :  { %v1491_v41 = vpop.f32.mrf.mxu1 }
 0x953   :  { %v962_v42 = vadd.f32 %v1491_v41, %v1345_v40 }
 0x954   :  { %v956_v43 = vpop.f32.mrf.mxu1 }
 0x955   :  { %967 = vst.msk [vmem:[#allocation2 + $0x8] sm:$0xff] %vm309_vm2, %v962_v42  ;;  %v957_v44 = vadd.f32 %v1345_v40, %v956_v43 }
 0x957   :  { %965 = vst.msk [vmem:[#allocation2] sm:$0xff] %vm309_vm2, %v957_v44 }
 0x95c   :  { %v989_v47 = vld [vmem:[#allocation2 + $0x8] sm:$0x1]  }
 0x95d   :  { %v995_v48 = vsel %vm994_vm6, %v989_v47, 0.0  ;;  %v2301_v60 = vmov %v989_v47 }
 0x95e   :  { %v996_v49 = vsel %vm982_vm5, %v995_v48, 0.0  ;;  %v975_v50 = vld [vmem:[#allocation2] sm:$0x1]  }
 0x95f   :  { %997 = vadd.xlane.f32.xlu1 %v996_v49  ;;  %v981_v51 = vsel %vm980_vm7, %v975_v50, 0.0  ;;  %v2302_v61 = vmov %v975_v50 }
 0x960   :  { %v983_v52 = vsel %vm982_vm5, %v981_v51, 0.0 }
 0x961   :  { %984 = vadd.xlane.f32.xlu0 %v983_v52 }
 0x9e8   :  { %v998_v55 = vpop.xlane.xlu1 %997 }
 0x9e9   :  { %v1000_v57 = vmul.f32 %v999_v54, %v998_v55  }
 0x9ea   :  { %v985_v58 = vpop.xlane.xlu0 %984 }
 0x9eb   :  { %v987_v59 = vmul.f32 %v986_v56, %v985_v58  }
 0x9ec LB: > { %v1025_v62 = vrot.slane %v1684_v50, %v1889_v27  ;;  %s1117_s12 = sshra.s32 %s1688_s21, 7  ;;  %v1138_v63 = vrot.slane %v1680_v47, %v1889_v27  ;;  %v1051_v0 = vrot.slane %v1676_v61, %v1889_v27  ;;  %v1164_v1 = vrot.slane %v1672_v60, %v1889_v27  ;;  %s1122_s14 = sand.u32 127, %s1688_s21  ;;  %s1688_s21 = sphi %s2037_s21, %s1008_s21   ;;  %v1684_v50 = vphi %v975_v50, %v2314_v50   ;;  %v1680_v47 = vphi %v989_v47, %v2313_v47   ;;  %v1676_v61 = vphi %v2302_v61, %v2312_v61   ;;  %v1672_v60 = vphi %v2301_v60, %v2311_v60   ;;  %v1668_v59 = vphi %v987_v59, %v2310_v59   ;;  %v1664_v57 = vphi %v1000_v57, %v2309_v57  }
 0x9ed   : > { %s1360_s13 = sshll.u32 %s1117_s12, 7  ;;  %s2086_s2 = sld [smem:[#allocation5 + %s1688_s21]] }
 0x9ee   : > { %v1026_v3 = vadd.f32 %v1025_v62, %v2023_v53  ;;  %s1361_s26 = sadd.s32 128, %s1360_s13  ;;  %v1139_v4 = vadd.f32 %v1138_v63, %v2023_v53  ;;  %v1052_v6 = vadd.f32 %v1051_v0, %v2023_v53  ;;  %v2068_v7 = vadd.f32 %v1164_v1, %v2023_v53  ;;  %s2104_s0 = sld [smem:[#allocation3 + %s1688_s21]] }
 0x9ef   : > { %s2070_s27 = sadd.s32 %s1361_s26, %s1122_s14  ;;  %s1015_s7 = scalar_lea.vmem [#allocation2], %s1688_s21 }
 0x9f0   : > { %v1027_v8 = vsel %vm309_vm2, %v1026_v3, -inf  ;;  %s2074_s28 = sld [smem:[#allocation5 + %s2070_s27]]  ;;  %v1053_v9 = vsel %vm309_vm2, %v1052_v6, -inf  ;;  %v1140_v10 = vsel %vm309_vm2, %v1139_v4, -inf  ;;  %v1166_v11 = vsel %vm309_vm2, %v2068_v7, -inf  ;;  %s1351_s20 = sadd.s32 4294967295, %s1688_s21 }
 0x9f1   : > { %1028 = vmax.xlane.f32.xlu0 %v1027_v8  ;;  %1054 = vmax.xlane.f32.xlu1 %v1053_v9  ;;  %v2108_v38 = vld [vmem:[%s1015_s7] sm:$0x1]  ;;  %s2111_s15 = sld [smem:[#allocation3 + %s2070_s27]]  ;;  %v2120_v46 = vld [vmem:[%s1015_s7 + $0x8] sm:$0x1]  ;;  %s1127_s19 = sshra.s32 %s1351_s20, 7 }
 0x9f2   : > { %s1362_s16 = sshll.u32 %s1127_s19, 7  ;;  %s1132_s30 = sand.u32 127, %s1351_s20 }
 0x9f3   : > { %s1018_s29 = scvt.s32.f32 %s2086_s2  ;;  %s1363_s9 = sadd.s32 128, %s1362_s16 }
 0x9f4   : > { %v1079_v45 = vstv %s2104_s0  ;;  %s1021_s10 = sld [smem:[#allocation3 + %s1351_s20]]  ;;  %s1133_s18 = sadd.s32 %s1363_s9, %s1132_s30 }
 0x9f5   : > { %1141 = vmax.xlane.f32.xlu0 %v1140_v10  ;;  %1167 = vmax.xlane.f32.xlu1 %v1166_v11  ;;  %s2100_s17 = ssub.f32 1.0, %s1018_s29  ;;  %v2116_v42 = vstv %s1018_s29  ;;  %vm2125_vm9 = vcmp.eq.s32.totalorder %v1873_v19, %v1079_v45  ;;  %s1085_s25 = sshra.s32 %s2104_s0, 7 }
 0x9f6   : > { %s1125_s11 = scvt.s32.f32 %s2074_s28  ;;  %s1134_s3 = sld [smem:[#allocation3 + %s1133_s18]] }
 0x9f7   : > { %v1100_v35 = vstv %s2100_s17  ;;  %s1198_s4 = sshra.s32 %s2111_s15, 7  ;;  %s1090_s5 = sand.u32 127, %s2104_s0 }
 0x9f8   : > { %s1212_s6 = ssub.f32 1.0, %s1125_s11  ;;  %v1104_v41 = vmul.f32 %v1676_v61, %v1100_v35  ;;  %v2131_v54 = vstv %s1125_s11  ;;  %s1203_s26 = sand.u32 127, %s2111_s15 }
 0x9f9   : > { %s1108_s29 = ssub.s32 1, %s2086_s2  ;;  %s1221_s0 = ssub.s32 1, %s2074_s28 }
 0x9fa   : > { %v1213_v12 = vstv %s1212_s6  ;;  %s1087_s8 = sadd.s32 %s1085_s25, %s1021_s10  ;;  %v1109_v45 = vstv %s1108_s29 }
 0x9fb   : > { %v2083_v13 = vmul.f32 %v1680_v47, %v1213_v12  ;;  %v1217_v14 = vmul.f32 %v1672_v60, %v1213_v12  ;;  %v1192_v60 = vstv %s2111_s15  ;;  %s1352_s1 = sshll.u32 %s1087_s8, 7 }
 0x9fc   : > { %vm1193_vm11 = vcmp.eq.s32.totalorder %v1873_v19, %v1192_v60  ;;  %s1200_s12 = sadd.s32 %s1198_s4, %s1134_s3  ;;  %s1091_s13 = sadd.s32 %s1352_s1, %s1090_s5 }
 0x9fd   : > { %v1194_v8 = vsel %vm1193_vm11, %v2120_v46, 0.0  ;;  %s1356_s14 = sshll.u32 %s1200_s12, 7  ;;  %s1092_s27 = sld [smem:[#allocation7 + %s1091_s13]] }
 0x9fe   : > { %v1195_v9 = vsel %vm982_vm5, %v1194_v8, 0.0  ;;  %s1204_s11 = sadd.s32 %s1356_s14, %s1203_s26 }
 0x9ff   : > { %s1205_s6 = sld [smem:[#allocation7 + %s1204_s11]] }
 0xa7a   : > { %v2088_v15 = vpop.xlane.xlu0 %1028  ;;  %v1055_v16 = vpop.xlane.xlu1 %1054 }
 0xa7b   : > { %v1030_v17 = vsub.f32 %v1026_v3, %v2088_v15  ;;  %v1061_v18 = vsel %vm1879_vm1, %v1055_v16, 0.0  ;;  %vm1056_vm8 = vcmp.ge.f32.partialorder %v1052_v6, %v1055_v16  ;;  %v1081_v3 = vsel %vm2125_vm9, %v2108_v38, 0.0 }
 0xa7c   : > { %v1062_v22 = vsel %vm309_vm2, %v1061_v18, 0.0  ;;  %v1057_v51 = vsel %vm1056_vm8, %v1876_v20, 8.0 }
 0xa7d   : > { %v1031_v23 = vmul.f32 1.442695, %v1030_v17  ;;  %v1063_v24 = vrot.slane %v1062_v22, 4  ;;  %v1058_v62 = vsel %vm309_vm2, %v1057_v51, inf  ;;  %v1093_v17 = vstv %s1092_s27 }
 0xa7e   : > { %v2095_v25 = vpop.xlane.xlu0 %1141  ;;  %v1168_v5 = vpop.xlane.xlu1 %1167 }
 0xa7f   : > { %1578 = vpow2.f32 %v1031_v23  ;;  %v1143_v2 = vsub.f32 %v1139_v4, %v2095_v25  ;;  %v1064_v26 = vadd.f32 %v1063_v24, %v1062_v22  ;;  %v1174_v28 = vsel %vm1879_vm1, %v1168_v5, 0.0 }
 0xa80   : > { %v1175_v29 = vsel %vm309_vm2, %v1174_v28, 0.0  ;;  %vm1169_vm10 = vcmp.ge.f32.partialorder %v2068_v7, %v1168_v5  ;;  %v1082_v7 = vsel %vm982_vm5, %v1081_v3, 0.0  ;;  %v1206_v28 = vstv %s1205_s6 }
 0xa81   : > { %v1144_v30 = vmul.f32 1.442695, %v1143_v2  ;;  %v1065_v31 = vrot.slane %v1064_v26, 2  ;;  %v1176_v32 = vrot.slane %v1175_v29, 4  ;;  %v1170_v1 = vsel %vm1169_vm10, %v1876_v20, 8.0 }
 0xa83   : > { %1580 = vpow2.f32 %v1144_v30  ;;  %v1066_v33 = vadd.f32 %v1065_v31, %v1064_v26  ;;  %v1177_v34 = vadd.f32 %v1176_v32, %v1175_v29 }
 0xa85   : > { %v1067_v36 = vrot.slane %v1066_v33, 1  ;;  %v1178_v37 = vrot.slane %v1177_v34, 2 }
 0xa87   : > { %v1068_v39 = vadd.f32 %v1067_v36, %v1066_v33  ;;  %v1179_v40 = vadd.f32 %v1178_v37, %v1177_v34 }
 0xa89   : > { %v1180_v43 = vrot.slane %v1179_v40, 1  ;;  %v1069_v44 = vadd.f32 %v1068_v39, %v2108_v38 }
 0xa8b   : > { %v1181_v47 = vadd.f32 %v1180_v43, %v1179_v40  ;;  %v1103_v48 = vmul.f32 %v2116_v42, %v1069_v44 }
 0xa8c   : > { %v1579_v49 = vpop.eup %1578 }
 0xa8d   : > { %v1033_v55 = vsel %vm309_vm2, %v1579_v49, 0.0  ;;  %v1182_v56 = vadd.f32 %v2120_v46, %v1181_v47  ;;  %v2136_v61 = vadd.f32 %v1104_v41, %v1103_v48  }
 0xa8e   : > { %1034 = vadd.xlane.f32.xlu0 %v1033_v55 }
 0xa8f   : > { %v2305_v58 = vmov %v2136_v61  ;;  %v1216_v63 = vmul.f32 %v2131_v54, %v1182_v56  ;;  %v1171_v61 = vsel %vm309_vm2, %v1170_v1, inf }
 0xa90   : > { %v1581_v0 = vpop.eup %1580 }
 0xa91   : > { %v1146_v4 = vsel %vm309_vm2, %v1581_v0, 0.0  ;;  %v2147_v60 = vadd.f32 %v1217_v14, %v1216_v63   ;;  %v1106_v63 = vstv %s2086_s2  ;;  %v1222_v0 = vstv %s1221_s0  ;;  %s1112_s2 = scalar_lea.vmem %s2274_s23, %s1688_s21  ;;  %s1008_s21 = sadd.s32 1, %s1688_s21  }
 0xa92   : > { %1147 = vadd.xlane.f32.xlu1 %v1146_v4  ;;  %1059 = vmin.xlane.f32.xlu0 %v1058_v62  ;;  %p1005_p1 = scmp.ge.s32.totalorder %s1008_s21, 8  }
 0xa93   : > { %v2306_v6 = vmov %v2147_v60  ;;  %vm1240_vm14 = vcmask (%p1005_p1), 0  }
 0xa96   : > { %1172 = vmin.xlane.f32.xlu1 %v1171_v61  ;;  %1083 = vadd.xlane.f32.xlu0 %v1082_v7 }
 0xa9a   : > { %1196 = vadd.xlane.f32.xlu1 %v1195_v9 }
 0xb17   : > { %v1035_v10 = vpop.xlane.xlu0 %1034 }
 0xb18   : > { %1582 = vlog2.f32 %v1035_v10 }
 0xb1b   : > { %v1148_v11 = vpop.xlane.xlu1 %1147  ;;  %v1060_v12 = vpop.xlane.xlu0 %1059 }
 0xb1c   : > { %1584 = vlog2.f32 %v1148_v11  ;;  %v1070_v14 = vsel %vm1879_vm1, %v1060_v12, 0.0  ;;  %v1219_v11 = vstv %s2074_s28  ;;  %v1223_v12 = vmul.u32 %v1222_v0, %v1873_v19 }
 0xb1d   : > { %v1071_v16 = vsel %vm309_vm2, %v1070_v14, 0.0 }
 0xb1e   : > { %v1072_v18 = vrot.slane %v1071_v16, 4 }
 0xb1f   : > { %v1173_v22 = vpop.xlane.xlu1 %1172  ;;  %v1084_v23 = vpop.xlane.xlu0 %1083 }
 0xb20   : > { %v1073_v24 = vadd.f32 %v1072_v18, %v1071_v16  ;;  %v1183_v5 = vsel %vm1879_vm1, %v1173_v22, 0.0  ;;  %v1094_v2 = vadd.f32 %v1093_v17, %v1084_v23 }
 0xb21   : > { %v1184_v26 = vsel %vm309_vm2, %v1183_v5, 0.0 }
 0xb22   : > { %v1074_v29 = vrot.slane %v1073_v24, 2  ;;  %v1185_v30 = vrot.slane %v1184_v26, 4  ;;  %v1096_v31 = vmul.f32 %v2116_v42, %v1094_v2 }
 0xb23   : > { %v1197_v32 = vpop.xlane.xlu1 %1196 }
 0xb24   : > { %v1075_v33 = vadd.f32 %v1074_v29, %v1073_v24  ;;  %v1186_v34 = vadd.f32 %v1185_v30, %v1184_v26  ;;  %v2167_v59 = vadd.f32 %v1668_v59, %v1096_v31   ;;  %v1207_v37 = vadd.f32 %v1206_v28, %v1197_v32 }
 0xb25   : > { %v1583_v39 = vpop.eup %1582  ;;  %v1101_v29 = vmul.f32 %v1684_v50, %v1100_v35 }
 0xb26   : > { %v2307_v36 = vmov %v2167_v59  ;;  %v1037_v40 = vmul.f32 0.6931472, %v1583_v39  ;;  %v1076_v41 = vrot.slane %v1075_v33, 1  ;;  %v1187_v43 = vrot.slane %v1186_v34, 2 }
 0xb27   : > { %v1209_v44 = vmul.f32 %v2131_v54, %v1207_v37 }
 0xb28   : > { %v1038_v47 = vadd.f32 %v1037_v40, %v2088_v15  ;;  %v1077_v48 = vadd.f32 %v1076_v41, %v1075_v33  ;;  %v1188_v49 = vadd.f32 %v1187_v43, %v1186_v34  ;;  %v1110_v15 = vmul.u32 %v1109_v45, %v1873_v19 }
 0xb29   : > { %v2173_v57 = vadd.f32 %v1664_v57, %v1209_v44   ;;  %v1585_v52 = vpop.eup %1584 }
 0xb2a   : > { %v1039_v59 = vsel %vm1879_vm1, %v1038_v47, 0.0  ;;  %v1150_v55 = vmul.f32 0.6931472, %v1585_v52  ;;  %v1492_v56 = vtrunc.f32 %v1077_v48  ;;  %v1189_v60 = vrot.slane %v1188_v49, 1 }
 0xb2b   : > { %v2308_v51 = vmov %v2173_v57  ;;  %v1040_v62 = vsel %vm309_vm2, %v1039_v59, 0.0  ;;  %v2310_v59 = vmov %v2307_v36 }
 0xb2c   : > { %v1041_v1 = vrot.slane %v1040_v62, 4  ;;  %v1151_v3 = vadd.f32 %v1150_v55, %v2095_v25  ;;  %v1493_v4 = vcvt.f32.s32 %v1492_v56  ;;  %v1190_v57 = vadd.f32 %v1189_v60, %v1188_v49 }
 0xb2d   : > { %v2311_v60 = vmov %v2306_v6 }
 0xb2e   : > { %v1042_v61 = vadd.f32 %v1041_v1, %v1040_v62  ;;  %v1152_v7 = vsel %vm1879_vm1, %v1151_v3, 0.0  ;;  %v1107_v8 = vmul.u32 %v1493_v4, %v1106_v63  ;;  %v1494_v9 = vtrunc.f32 %v1190_v57 }
 0xb2f   : > { %v1153_v10 = vsel %vm309_vm2, %v1152_v7, 0.0  ;;  %v2309_v57 = vmov %v2308_v51 }
 0xb30   : > { %v1043_v14 = vrot.slane %v1042_v61, 2  ;;  %v1154_v25 = vrot.slane %v1153_v10, 4  ;;  %v1111_v16 = vadd.s32 %v1110_v15, %v1107_v8  ;;  %v1495_v17 = vcvt.f32.s32 %v1494_v9 }
 0xb32   : > { %v1044_v18 = vadd.f32 %v1043_v14, %v1042_v61  ;;  %v1155_v22 = vadd.f32 %v1154_v25, %v1153_v10  ;;  %1113 = vst.msk [vmem:[%s1112_s2] sm:$0x1] %vm982_vm5, %v1111_v16  ;;  %v1220_v23 = vmul.u32 %v1495_v17, %v1219_v11  ;;  %v2312_v61 = vmov %v2305_v58 }
 0xb34   : > { %v1045_v24 = vrot.slane %v1044_v18, 1  ;;  %v1156_v5 = vrot.slane %v1155_v22, 2  ;;  %v1224_v2 = vadd.s32 %v1223_v12, %v1220_v23 }
 0xb36   : > { %v1157_v26 = vadd.f32 %v1156_v5, %v1155_v22  ;;  %1357 = vst.msk [vmem:[%s1112_s2 + $0x8] sm:$0x1] %vm982_vm5, %v1224_v2  ;;  %v1046_v28 = vadd.f32 %v1045_v24, %v1044_v18 }
 0xb38   : > { %v1158_v30 = vrot.slane %v1157_v26, 1  ;;  %v1047_v31 = vadd.f32 %v1046_v28, %v2108_v38  ;;  %v1267_v38 = vsel (%p1005_p1), %vm982_vm5, %v2306_v6, -inf }
 0xb3a   : > { %v1098_v32 = vmul.f32 %v2116_v42, %v1047_v31  ;;  %v1159_v33 = vadd.f32 %v1158_v30, %v1157_v26 }
 0xb3c   : > { %v1102_v34 = vadd.f32 %v1101_v29, %v1098_v32   ;;  %v1160_v37 = vadd.f32 %v2120_v46, %v1159_v33 }
 0xb3e   : > { %v1211_v39 = vmul.f32 %v2131_v54, %v1160_v37  ;;  %v2314_v50 = vmov %v1102_v34  ;;  %1007 = sbr.rel (!%p1005_p1) target bundleno = 2540 (0x9ec), region = 152 }
 0xb3f   :  { %v1227_v50 = vsel (%p1005_p1), %vm982_vm5, %v1102_v34, -inf }
 0xb40   : > { %v1215_v40 = vadd.f32 %v2083_v13, %v1211_v39   ;;  %v1242_v13 = vsel (%p1005_p1), %vm982_vm5, %v2305_v58, -inf  ;;  %1228 = vmax.xlane.f32.xlu0 (%p1005_p1), %v1227_v50 }
 0xb41   :  { %1243 = vmax.xlane.f32.xlu1 (%p1005_p1), %v1242_v13 }
 0xb42   : > { %v2313_v47 = vmov %v1215_v40  ;;  %v1252_v35 = vsel (%p1005_p1), %vm982_vm5, %v1215_v40, -inf }
 0xb44   :  { %1253 = vmax.xlane.f32.xlu0 %v1252_v35 }
 0xb45   :  { %1268 = vmax.xlane.f32.xlu1 %v1267_v38 }
 0xbc9   :  { %v1229_v42 = vpop.xlane.xlu0 %1228 }
 0xbca   :  { %v1230_v46 = vsub.f32 %v1102_v34, %v1229_v42  ;;  %v1244_v21 = vpop.xlane.xlu1 %1243 }
 0xbcb   :  { %vm1245_vm12 = vcmp.ge.f32.partialorder %v2305_v58, %v1244_v21 }
 0xbcc   :  { %v1231_v54 = vmul.f32 1.442695, %v1230_v46  ;;  %v1246_v44 = vsel %vm1245_vm12, %v1876_v20, 8.0 }
 0xbcd   :  { %v1254_v41 = vpop.xlane.xlu0 %1253  ;;  %v1247_v47 = vsel %vm982_vm5, %v1246_v44, inf }
 0xbce   :  { %1586 = vpow2.f32 %v1231_v54  ;;  %v1255_v43 = vsub.f32 %v1215_v40, %v1254_v41  ;;  %v1269_v27 = vpop.xlane.xlu1 %1268 }
 0xbcf   :  { %vm1270_vm13 = vcmp.ge.f32.partialorder %v2306_v6, %v1269_v27 }
 0xbd0   :  { %v1256_v19 = vmul.f32 1.442695, %v1255_v43  ;;  %v1271_v49 = vsel %vm1270_vm13, %v1876_v20, 8.0 }
 0xbd1   :  { %v1272_v58 = vsel %vm982_vm5, %v1271_v49, inf }
 0xbd2   :  { %1588 = vpow2.f32 %v1256_v19 }
 0xbdb   :  { %v1587_v53 = vpop.eup %1586 }
 0xbdc   :  { %v1233_v45 = vsel %vm982_vm5, %v1587_v53, 0.0 }
 0xbdd   :  { %1234 = vadd.xlane.f32.xlu0 %v1233_v45 }
 0xbdf   :  { %v1589_v48 = vpop.eup %1588 }
 0xbe0   :  { %v1258_v52 = vsel %vm982_vm5, %v1589_v48, 0.0 }
 0xbe1   :  { %1259 = vadd.xlane.f32.xlu1 %v1258_v52  ;;  %1248 = vmin.xlane.f32.xlu0 %v1247_v47 }
 0xbe5   :  { %1273 = vmin.xlane.f32.xlu1 %v1272_v58 }
 0xc66   :  { %v1235_v59 = vpop.xlane.xlu0 %1234 }
 0xc67   :  { %1590 = vlog2.f32 %v1235_v59 }
 0xc6a   :  { %v1260_v55 = vpop.xlane.xlu1 %1259  ;;  %v1249_v56 = vpop.xlane.xlu0 %1248 }
 0xc6b   :  { %1592 = vlog2.f32 %v1260_v55  ;;  %v1496_v60 = vtrunc.f32 %v1249_v56 }
 0xc6d   :  { %v1497_v6 = vcvt.f32.s32 %v1496_v60 }
 0xc6e   :  { %v1274_v62 = vpop.xlane.xlu1 %1273 }
 0xc6f   :  { %1251 = vst.msk [vmem:[%s2275_s24] sm:$0x1] %vm1240_vm14, %v1497_v6  ;;  %v1498_v20 = vtrunc.f32 %v1274_v62 }
 0xc71   :  { %v1499_v63 = vcvt.f32.s32 %v1498_v20 }
 0xc73   :  { %1359 = vst.msk [vmem:[%s2275_s24 + $0x1] sm:$0x1] %vm1240_vm14, %v1499_v63 }
 0xc74   :  { %v1591_v15 = vpop.eup %1590 }
 0xc75   :  { %v1237_v0 = vmul.f32 0.6931472, %v1591_v15 }
 0xc77   :  { %v1238_v1 = vadd.f32 %v1237_v0, %v1229_v42 }
 0xc78   :  { %v1593_v3 = vpop.eup %1592 }
 0xc79   :  { %v1239_v4 = vsub.f32 %v1238_v1, %v2307_v36  ;;  %v1262_v57 = vmul.f32 0.6931472, %v1593_v3 }
 0xc7b   :  { %v1263_v61 = vadd.f32 %v1262_v57, %v1254_v41  ;;  %1241 = vst.msk [vmem:[%s2273_s22] sm:$0x1] %vm1240_vm14, %v1239_v4 }
 0xc7d   :  { %v1264_v7 = vsub.f32 %v1263_v61, %v2308_v51 }
 0xc7f   :  { %1358 = vst.msk [vmem:[%s2273_s22 + $0x1] sm:$0x1] %vm1240_vm14, %v1264_v7 }
 0xc80   :  { %1290 = vsyncpa [#allocation4], 1 }
 0xc81   :  { %1291 = vsyncpa [#allocation6], 1 }

</bundles_post_ra>
